<compile_context>
chip_gen: v6e
topology: v6e:2x2x1
jax: 0.10.0
libtpu: 0.0.40
codegen_flags: <defaults>
</compile_context>

<pallas_src>
import numpy as np
import jax
import jax.numpy as jnp
from jax.experimental import pallas as pl
from jax.experimental.pallas import tpu as pltpu

BN_EPS = 1e-5


# ----------------------------- fused Pallas kernel ---------------------------

def _make_fused_kernel(*, W, BHW, stride, expand, shortcut):
    """Fused InvertedResidual kernel; B images folded into the lane axis.

    In-kernel activation layout is (channels, B*H*W): channels on sublanes,
    (image, h, w) flattened onto lanes (lane-dense).
    """

    def kernel(*refs):
        it = iter(refs)
        x_ref = next(it)                                   # (Cin, B*HW)
        if expand:
            we_ref, b1_ref = next(it), next(it)            # (mid, Cin), (mid, 1)
        wdw_ref = next(it)                                 # (9, mid, B*HW) masked+scaled
        b2_ref = next(it)                                  # (mid, 1)
        wp_ref = next(it)                                  # (Cout, mid)   BN-folded
        b3_ref = next(it)                                  # (Cout, 1)
        sel_ref = next(it) if stride != 1 else None        # (B*HW, B*HWo)
        o_ref = next(it)                                   # (Cout, B*HWo)

        x = x_ref[...]                                     # (Cin, B*HW), f32

        # -- 1) 1x1 expand conv (BN scale pre-folded) + bias + ReLU6 (MXU) ----
        if expand:
            a = jnp.dot(we_ref[...], x, preferred_element_type=jnp.float32)
            a = jnp.clip(a + b1_ref[...], 0.0, 6.0)
        else:
            a = x

        # -- 2) depthwise 3x3 (pad=1): lane rolls + masked/scaled weights -----
        # One FMA per tap; boundary masks (and the BN scale) are already baked
        # into wdw_ref, which also kills any cross-image lane wrap.
        acc = None
        for dh in (-1, 0, 1):
            for dw in (-1, 0, 1):
                k = (dh + 1) * 3 + (dw + 1)
                shift = dh * W + dw                        # static python int
                shifted = a if shift == 0 else pltpu.roll(a, (-shift) % BHW, axis=1)
                term = shifted * wdw_ref[k]
                acc = term if acc is None else acc + term
        a = jnp.clip(acc + b2_ref[...], 0.0, 6.0)

        # -- 3) 1x1 projection (BN folded), then stride subsample, + residual -
        y = jnp.dot(wp_ref[...], a, preferred_element_type=jnp.float32)
        if stride != 1:
            # Projection first (Cout < mid), then one 0/1 selection matmul.
            y = jnp.dot(y, sel_ref[...], preferred_element_type=jnp.float32)
        y = y + b3_ref[...]
        if shortcut:                                       # stride==1, Cin==Cout
            y = y + x
        o_ref[...] = y.astype(o_ref.dtype)

    return kernel


# ------------------------------ wrapper --------------------------------------

def inverted_residual_forward(x_nchw, params, *, in_channels, out_channels,
                              stride, expand_ratio, images_per_block=None):
    """Fused InvertedResidual forward. x: (N, Cin, H, W) NCHW -> NCHW output."""
    N, Cin, H, W = x_nchw.shape
    assert Cin == in_channels
    Cout = out_channels
    expand = expand_ratio != 1
    shortcut = (stride == 1) and (in_channels == out_channels)
    mid = int(round(in_channels * expand_ratio))
    Ho = (H + 2 - 3) // stride + 1
    Wo = (W + 2 - 3) // stride + 1
    HW, HWo = H * W, Ho * Wo

    # Images per grid step (batch folded into lanes).  Default: whole batch.
    # v7x: pass images_per_block = ceil(N/2) to feed both TensorCores.
    B = N if images_per_block is None else int(images_per_block)
    assert N % B == 0, "images_per_block must divide the batch size"
    G = N // B
    BHW, BHWo = B * HW, B * HWo

    # NCHW -> lane-dense (Cin, N*HW): channels on sublanes, (image, h, w) on
    # lanes.  The transpose is tiny layout plumbing done once in XLA; all the
    # heavy math stays inside the single fused kernel.
    x2 = jnp.transpose(x_nchw.reshape(N, Cin, HW), (1, 0, 2)).reshape(Cin, N * HW)

    def const_spec(shape):
        return pl.BlockSpec(shape, lambda g: (0,) * len(shape))

    args = [x2]
    in_specs = [pl.BlockSpec((Cin, BHW), lambda g: (0, g))]

    if expand:
        s1, b1 = params["bn1"]
        w_e = params["w_expand"] * s1[:, None]              # fold BN scale
        args += [w_e, b1.reshape(mid, 1)]
        in_specs += [const_spec((mid, Cin)), const_spec((mid, 1))]

    # Depthwise taps: masked + BN-scaled weights, (9, mid, B*HW).  mask[k] is
    # the per-image 0/1 validity map for tap (dh, dw), tiled over the B images
    # folded into the lane axis (this is what keeps pltpu.roll's lane wrap from
    # leaking across image boundaries).
    s2, b2 = params["bn2"]
    hh, ww = np.meshgrid(np.arange(H), np.arange(W), indexing="ij")
    masks = []
    for dh in (-1, 0, 1):
        for dw in (-1, 0, 1):
            valid = ((hh + dh >= 0) & (hh + dh < H) &
                     (ww + dw >= 0) & (ww + dw < W)).reshape(-1)
            masks.append(np.tile(valid.astype(np.float32), B))   # (B*HW,)
    masks_np = np.stack(masks, 0)                                # (9, B*HW)
    w_dw_scaled = (params["w_dw"].reshape(mid, 9) * s2[:, None]).T   # (9, mid)
    w_dw_full = w_dw_scaled[:, :, None] * jnp.asarray(masks_np)[:, None, :]
    args += [w_dw_full.astype(jnp.float32), b2.reshape(mid, 1)]
    in_specs += [const_spec((9, mid, BHW)), const_spec((mid, 1))]

    s3, b3 = params["bn3"]
    w_p = params["w_proj"] * s3[:, None]                    # fold BN scale
    args += [w_p, b3.reshape(Cout, 1)]
    in_specs += [const_spec((Cout, mid)), const_spec((Cout, 1))]

    if stride != 1:
        # Block-diagonal 0/1 selection: lane (b, h, w) -> output lane (b, oh, ow)
        # for the 3x3 / pad=1 strided conv centres (oh*stride, ow*stride).
        src = (np.arange(Ho)[:, None] * stride * W
               + np.arange(Wo)[None, :] * stride).reshape(-1)
        sel_img = (np.arange(HW)[:, None] == src[None, :]).astype(np.float32)
        sel = np.kron(np.eye(B, dtype=np.float32), sel_img)     # (B*HW, B*HWo)
        args.append(jnp.asarray(sel))
        in_specs.append(const_spec((BHW, BHWo)))

    kernel = _make_fused_kernel(W=W, BHW=BHW, stride=stride,
                                expand=expand, shortcut=shortcut)

    flops = 2 * ((mid * Cin * N * HW if expand else 0)
                 + 9 * mid * N * HW
                 + Cout * mid * N * HW
                 + (Cout * BHW * BHWo * G if stride != 1 else 0))
    bytes_accessed = 4 * (N * Cin * HW + N * Cout * HWo
                          + sum(int(a.size) for a in args[1:]))

    out2 = pl.pallas_call(
        kernel,
        out_shape=jax.ShapeDtypeStruct((Cout, N * HWo), x_nchw.dtype),
        grid=(G,),
        in_specs=in_specs,
        out_specs=pl.BlockSpec((Cout, BHWo), lambda g: (0, g)),
        compiler_params=pltpu.CompilerParams(
            dimension_semantics=("parallel",)),
        cost_estimate=pl.CostEstimate(
            flops=flops, transcendentals=0, bytes_accessed=bytes_accessed),
    )(*args)

    # (Cout, N*HWo) -> NCHW
    return jnp.transpose(out2.reshape(Cout, N, HWo),
                         (1, 0, 2)).reshape(N, Cout, Ho, Wo)


# --------------------------- deterministic params -----------------------------

def _make_bn(key, c):
    k1, k2, k3, k4 = jax.random.split(key, 4)
    gamma = 1.0 + 0.1 * jax.random.normal(k1, (c,), jnp.float32)
    beta = 0.1 * jax.random.normal(k2, (c,), jnp.float32)
    mean = 0.1 * jax.random.normal(k3, (c,), jnp.float32)
    var = jnp.abs(jax.random.normal(k4, (c,), jnp.float32)) + 0.5
    scale = gamma / jnp.sqrt(var + BN_EPS)
    bias = beta - mean * scale
    return scale, bias


def make_params(key, cin, cout, expand_ratio):
    mid = int(round(cin * expand_ratio))
    ks = jax.random.split(key, 6)
    p = {}
    if expand_ratio != 1:
        p["w_expand"] = 0.1 * jax.random.normal(ks[0], (mid, cin), jnp.float32)
        p["bn1"] = _make_bn(ks[1], mid)
    p["w_dw"] = 0.1 * jax.random.normal(ks[2], (mid, 3, 3), jnp.float32)
    p["bn2"] = _make_bn(ks[3], mid)
    p["w_proj"] = 0.1 * jax.random.normal(ks[4], (cout, mid), jnp.float32)
    p["bn3"] = _make_bn(ks[5], cout)
    return p


# ------------------------------ pure-JAX reference ----------------------------

def reference_forward(x, params, *, in_channels, out_channels, stride, expand_ratio):
    """Pure-JAX (XLA) reference in NCHW, mirroring the PyTorch module."""
    shortcut = (stride == 1) and (in_channels == out_channels)
    y = x
    if expand_ratio != 1:
        s, b = params["bn1"]
        y = jnp.einsum("nchw,dc->ndhw", y, params["w_expand"])
        y = jnp.clip(y * s[None, :, None, None] + b[None, :, None, None], 0.0, 6.0)
    mid = y.shape[1]
    s, b = params["bn2"]
    y = jax.lax.conv_general_dilated(
        y, params["w_dw"][:, None, :, :], (stride, stride), ((1, 1), (1, 1)),
        dimension_numbers=("NCHW", "OIHW", "NCHW"), feature_group_count=mid)
    y = jnp.clip(y * s[None, :, None, None] + b[None, :, None, None], 0.0, 6.0)
    s, b = params["bn3"]
    y = jnp.einsum("nchw,dc->ndhw", y, params["w_proj"])
    y = y * s[None, :, None, None] + b[None, :, None, None]
    if shortcut:
        y = y + x
    return y


# ------------------------------------ main ------------------------------------

if __name__ == "__main__":
    key = jax.random.PRNGKey(0)

    configs = [
        # (N, Cin, H, W, Cout, stride, expand_ratio)
        (2, 8, 16, 16, 8, 1, 4),     # shortcut path (stride=1, Cin==Cout)
        (2, 8, 16, 16, 16, 2, 4),    # downsampling (stride=2; 128-lane output)
        (2, 16, 16, 16, 16, 1, 1),   # expand_ratio == 1 (no expand conv)
    ]
    for (N, Cin, H, W, Cout, stride, er) in configs:
        kx, kp, key = jax.random.split(key, 3)
        x = jax.random.normal(kx, (N, Cin, H, W), jnp.float32)   # PyTorch-style NCHW
        params = make_params(kp, Cin, Cout, er)

        out = inverted_residual_forward(
            x, params, in_channels=Cin, out_channels=Cout,
            stride=stride, expand_ratio=er)
        out = jax.block_until_ready(out)

        ref = reference_forward(
            x, params, in_channels=Cin, out_channels=Cout,
            stride=stride, expand_ratio=er)
        np.testing.assert_allclose(np.asarray(out), np.asarray(ref),
                                   rtol=5e-4, atol=5e-4)

    print("KERNEL_OK")
</pallas_src>

<mosaic_0001>
module attributes {stable_mosaic.version = 11 : i64} {
  func.func @kernel(%arg0: i32, %arg1: memref<8x512xf32, #tpu.memory_space<vmem>>, %arg2: memref<32x8xf32, #tpu.memory_space<vmem>>, %arg3: memref<32x1xf32, #tpu.memory_space<vmem>>, %arg4: memref<9x32x512xf32, #tpu.memory_space<vmem>>, %arg5: memref<32x1xf32, #tpu.memory_space<vmem>>, %arg6: memref<8x32xf32, #tpu.memory_space<vmem>>, %arg7: memref<8x1xf32, #tpu.memory_space<vmem>>, %arg8: memref<8x512xf32, #tpu.memory_space<vmem>>) attributes {dimension_semantics = [#tpu.dimension_semantics<parallel>], iteration_bounds = array<i64: 1>, scalar_prefetch = 0 : i64, scratch_operands = 0 : i64, tpu.core_type = #tpu.core_type<tc>, window_params = [{transform_indices = @transform_0, window_bounds = array<i64: 8, 512>}, {pipeline_mode = #tpu.pipeline_mode<synchronous>, transform_indices = @transform_1, window_bounds = array<i64: 32, 8>}, {pipeline_mode = #tpu.pipeline_mode<synchronous>, transform_indices = @transform_2, window_bounds = array<i64: 32, 1>}, {pipeline_mode = #tpu.pipeline_mode<synchronous>, transform_indices = @transform_3, window_bounds = array<i64: 9, 32, 512>}, {pipeline_mode = #tpu.pipeline_mode<synchronous>, transform_indices = @transform_4, window_bounds = array<i64: 32, 1>}, {pipeline_mode = #tpu.pipeline_mode<synchronous>, transform_indices = @transform_5, window_bounds = array<i64: 8, 32>}, {pipeline_mode = #tpu.pipeline_mode<synchronous>, transform_indices = @transform_6, window_bounds = array<i64: 8, 1>}, {transform_indices = @transform_7, window_bounds = array<i64: 8, 512>}]} {
    %c0 = arith.constant 0 : index
    %c0_0 = arith.constant 0 : index
    %0 = vector.load %arg1[%c0, %c0_0] : memref<8x512xf32, #tpu.memory_space<vmem>>, vector<8x512xf32>
    %c0_1 = arith.constant 0 : index
    %c0_2 = arith.constant 0 : index
    %1 = vector.load %arg2[%c0_1, %c0_2] : memref<32x8xf32, #tpu.memory_space<vmem>>, vector<32x8xf32>
    %cst = arith.constant dense<0.000000e+00> : vector<32x512xf32>
    %2 = tpu.matmul %1, %0, %cst {dimension_numbers = #tpu.dot_dimension_numbers<[1], [0], [0], [1], [0, 0, 1, 1], [], []>} : vector<32x8xf32>, vector<8x512xf32>, vector<32x512xf32> -> vector<32x512xf32>
    %c0_3 = arith.constant 0 : index
    %c0_4 = arith.constant 0 : index
    %3 = vector.load %arg3[%c0_3, %c0_4] : memref<32x1xf32, #tpu.memory_space<vmem>>, vector<32x1xf32>
    %4 = vector.broadcast %3 : vector<32x1xf32> to vector<32x512xf32>
    %5 = arith.addf %2, %4 : vector<32x512xf32>
    %cst_5 = arith.constant 0.000000e+00 : f32
    %cst_6 = arith.constant 6.000000e+00 : f32
    %6 = vector.broadcast %cst_5 : f32 to vector<32x512xf32>
    %7 = arith.maximumf %6, %5 : vector<32x512xf32>
    %8 = vector.broadcast %cst_6 : f32 to vector<32x512xf32>
    %9 = arith.minimumf %8, %7 : vector<32x512xf32>
    %c17_i32 = arith.constant 17 : i32
    %10 = tpu.dynamic_rotate %9 by %c17_i32 dim 1 : vector<32x512xf32>, i32 -> vector<32x512xf32>
    %c0_7 = arith.constant 0 : index
    %c0_8 = arith.constant 0 : index
    %c0_9 = arith.constant 0 : index
    %11 = vector.load %arg4[%c0_7, %c0_8, %c0_9] : memref<9x32x512xf32, #tpu.memory_space<vmem>>, vector<1x32x512xf32>
    %12 = vector.shape_cast %11 : vector<1x32x512xf32> to vector<32x512xf32>
    %13 = arith.mulf %10, %12 : vector<32x512xf32>
    %c16_i32 = arith.constant 16 : i32
    %14 = tpu.dynamic_rotate %9 by %c16_i32 dim 1 : vector<32x512xf32>, i32 -> vector<32x512xf32>
    %c1 = arith.constant 1 : index
    %c0_10 = arith.constant 0 : index
    %c0_11 = arith.constant 0 : index
    %15 = vector.load %arg4[%c1, %c0_10, %c0_11] : memref<9x32x512xf32, #tpu.memory_space<vmem>>, vector<1x32x512xf32>
    %16 = vector.shape_cast %15 : vector<1x32x512xf32> to vector<32x512xf32>
    %17 = arith.mulf %14, %16 : vector<32x512xf32>
    %18 = arith.addf %13, %17 : vector<32x512xf32>
    %c15_i32 = arith.constant 15 : i32
    %19 = tpu.dynamic_rotate %9 by %c15_i32 dim 1 : vector<32x512xf32>, i32 -> vector<32x512xf32>
    %c2 = arith.constant 2 : index
    %c0_12 = arith.constant 0 : index
    %c0_13 = arith.constant 0 : index
    %20 = vector.load %arg4[%c2, %c0_12, %c0_13] : memref<9x32x512xf32, #tpu.memory_space<vmem>>, vector<1x32x512xf32>
    %21 = vector.shape_cast %20 : vector<1x32x512xf32> to vector<32x512xf32>
    %22 = arith.mulf %19, %21 : vector<32x512xf32>
    %23 = arith.addf %18, %22 : vector<32x512xf32>
    %c1_i32 = arith.constant 1 : i32
    %24 = tpu.dynamic_rotate %9 by %c1_i32 dim 1 : vector<32x512xf32>, i32 -> vector<32x512xf32>
    %c3 = arith.constant 3 : index
    %c0_14 = arith.constant 0 : index
    %c0_15 = arith.constant 0 : index
    %25 = vector.load %arg4[%c3, %c0_14, %c0_15] : memref<9x32x512xf32, #tpu.memory_space<vmem>>, vector<1x32x512xf32>
    %26 = vector.shape_cast %25 : vector<1x32x512xf32> to vector<32x512xf32>
    %27 = arith.mulf %24, %26 : vector<32x512xf32>
    %28 = arith.addf %23, %27 : vector<32x512xf32>
    %c4 = arith.constant 4 : index
    %c0_16 = arith.constant 0 : index
    %c0_17 = arith.constant 0 : index
    %29 = vector.load %arg4[%c4, %c0_16, %c0_17] : memref<9x32x512xf32, #tpu.memory_space<vmem>>, vector<1x32x512xf32>
    %30 = vector.shape_cast %29 : vector<1x32x512xf32> to vector<32x512xf32>
    %31 = arith.mulf %9, %30 : vector<32x512xf32>
    %32 = arith.addf %28, %31 : vector<32x512xf32>
    %c511_i32 = arith.constant 511 : i32
    %33 = tpu.dynamic_rotate %9 by %c511_i32 dim 1 : vector<32x512xf32>, i32 -> vector<32x512xf32>
    %c5 = arith.constant 5 : index
    %c0_18 = arith.constant 0 : index
    %c0_19 = arith.constant 0 : index
    %34 = vector.load %arg4[%c5, %c0_18, %c0_19] : memref<9x32x512xf32, #tpu.memory_space<vmem>>, vector<1x32x512xf32>
    %35 = vector.shape_cast %34 : vector<1x32x512xf32> to vector<32x512xf32>
    %36 = arith.mulf %33, %35 : vector<32x512xf32>
    %37 = arith.addf %32, %36 : vector<32x512xf32>
    %c497_i32 = arith.constant 497 : i32
    %38 = tpu.dynamic_rotate %9 by %c497_i32 dim 1 : vector<32x512xf32>, i32 -> vector<32x512xf32>
    %c6 = arith.constant 6 : index
    %c0_20 = arith.constant 0 : index
    %c0_21 = arith.constant 0 : index
    %39 = vector.load %arg4[%c6, %c0_20, %c0_21] : memref<9x32x512xf32, #tpu.memory_space<vmem>>, vector<1x32x512xf32>
    %40 = vector.shape_cast %39 : vector<1x32x512xf32> to vector<32x512xf32>
    %41 = arith.mulf %38, %40 : vector<32x512xf32>
    %42 = arith.addf %37, %41 : vector<32x512xf32>
    %c496_i32 = arith.constant 496 : i32
    %43 = tpu.dynamic_rotate %9 by %c496_i32 dim 1 : vector<32x512xf32>, i32 -> vector<32x512xf32>
    %c7 = arith.constant 7 : index
    %c0_22 = arith.constant 0 : index
    %c0_23 = arith.constant 0 : index
    %44 = vector.load %arg4[%c7, %c0_22, %c0_23] : memref<9x32x512xf32, #tpu.memory_space<vmem>>, vector<1x32x512xf32>
    %45 = vector.shape_cast %44 : vector<1x32x512xf32> to vector<32x512xf32>
    %46 = arith.mulf %43, %45 : vector<32x512xf32>
    %47 = arith.addf %42, %46 : vector<32x512xf32>
    %c495_i32 = arith.constant 495 : i32
    %48 = tpu.dynamic_rotate %9 by %c495_i32 dim 1 : vector<32x512xf32>, i32 -> vector<32x512xf32>
    %c8 = arith.constant 8 : index
    %c0_24 = arith.constant 0 : index
    %c0_25 = arith.constant 0 : index
    %49 = vector.load %arg4[%c8, %c0_24, %c0_25] : memref<9x32x512xf32, #tpu.memory_space<vmem>>, vector<1x32x512xf32>
    %50 = vector.shape_cast %49 : vector<1x32x512xf32> to vector<32x512xf32>
    %51 = arith.mulf %48, %50 : vector<32x512xf32>
    %52 = arith.addf %47, %51 : vector<32x512xf32>
    %c0_26 = arith.constant 0 : index
    %c0_27 = arith.constant 0 : index
    %53 = vector.load %arg5[%c0_26, %c0_27] : memref<32x1xf32, #tpu.memory_space<vmem>>, vector<32x1xf32>
    %54 = vector.broadcast %53 : vector<32x1xf32> to vector<32x512xf32>
    %55 = arith.addf %52, %54 : vector<32x512xf32>
    %cst_28 = arith.constant 0.000000e+00 : f32
    %cst_29 = arith.constant 6.000000e+00 : f32
    %56 = vector.broadcast %cst_28 : f32 to vector<32x512xf32>
    %57 = arith.maximumf %56, %55 : vector<32x512xf32>
    %58 = vector.broadcast %cst_29 : f32 to vector<32x512xf32>
    %59 = arith.minimumf %58, %57 : vector<32x512xf32>
    %c0_30 = arith.constant 0 : index
    %c0_31 = arith.constant 0 : index
    %60 = vector.load %arg6[%c0_30, %c0_31] : memref<8x32xf32, #tpu.memory_space<vmem>>, vector<8x32xf32>
    %cst_32 = arith.constant dense<0.000000e+00> : vector<8x512xf32>
    %61 = tpu.matmul %60, %59, %cst_32 {dimension_numbers = #tpu.dot_dimension_numbers<[1], [0], [0], [1], [0, 0, 1, 1], [], []>} : vector<8x32xf32>, vector<32x512xf32>, vector<8x512xf32> -> vector<8x512xf32>
    %c0_33 = arith.constant 0 : index
    %c0_34 = arith.constant 0 : index
    %62 = vector.load %arg7[%c0_33, %c0_34] : memref<8x1xf32, #tpu.memory_space<vmem>>, vector<8x1xf32>
    %63 = vector.broadcast %62 : vector<8x1xf32> to vector<8x512xf32>
    %64 = arith.addf %61, %63 : vector<8x512xf32>
    %65 = arith.addf %64, %0 : vector<8x512xf32>
    %c0_35 = arith.constant 0 : index
    %c0_36 = arith.constant 0 : index
    %66 = vector.load %arg8[%c0_35, %c0_36] : memref<8x512xf32, #tpu.memory_space<vmem>>, vector<8x512xf32>
    tpu.vector_store %arg8[%c0_35, %c0_36], %65 {strides = array<i32>} : memref<8x512xf32, #tpu.memory_space<vmem>>, vector<8x512xf32>,
    return
  }
  func.func @transform_0(%arg0: i32) -> (i32, i32) {
    %c0_i32 = arith.constant 0 : i32
    %c0_i32_0 = arith.constant 0 : i32
    return %c0_i32, %arg0 : i32, i32
  }
  func.func @transform_1(%arg0: i32) -> (i32, i32) {
    %c0_i32 = arith.constant 0 : i32
    %c0_i32_0 = arith.constant 0 : i32
    %c0_i32_1 = arith.constant 0 : i32
    return %c0_i32, %c0_i32_0 : i32, i32
  }
  func.func @transform_2(%arg0: i32) -> (i32, i32) {
    %c0_i32 = arith.constant 0 : i32
    %c0_i32_0 = arith.constant 0 : i32
    %c0_i32_1 = arith.constant 0 : i32
    return %c0_i32, %c0_i32_0 : i32, i32
  }
  func.func @transform_3(%arg0: i32) -> (i32, i32, i32) {
    %c0_i32 = arith.constant 0 : i32
    %c0_i32_0 = arith.constant 0 : i32
    %c0_i32_1 = arith.constant 0 : i32
    %c0_i32_2 = arith.constant 0 : i32
    return %c0_i32, %c0_i32_0, %c0_i32_1 : i32, i32, i32
  }
  func.func @transform_4(%arg0: i32) -> (i32, i32) {
    %c0_i32 = arith.constant 0 : i32
    %c0_i32_0 = arith.constant 0 : i32
    %c0_i32_1 = arith.constant 0 : i32
    return %c0_i32, %c0_i32_0 : i32, i32
  }
  func.func @transform_5(%arg0: i32) -> (i32, i32) {
    %c0_i32 = arith.constant 0 : i32
    %c0_i32_0 = arith.constant 0 : i32
    %c0_i32_1 = arith.constant 0 : i32
    return %c0_i32, %c0_i32_0 : i32, i32
  }
  func.func @transform_6(%arg0: i32) -> (i32, i32) {
    %c0_i32 = arith.constant 0 : i32
    %c0_i32_0 = arith.constant 0 : i32
    %c0_i32_1 = arith.constant 0 : i32
    return %c0_i32, %c0_i32_0 : i32, i32
  }
  func.func @transform_7(%arg0: i32) -> (i32, i32) {
    %c0_i32 = arith.constant 0 : i32
    %c0_i32_0 = arith.constant 0 : i32
    return %c0_i32, %arg0 : i32, i32
  }
}

</mosaic_0001>

<bundles_post_ra>
// kernel: tpu_custom_call.1
= control target key start
LH: loop header
LB: loop body
LE: loop exit
PB: predicated region body
PF: predicated region fallthrough
CT: control target
= control target key end

     0   :  { %12 = vsyncpa [#allocation3], 0  ;;  %s2336_s0 = inlined_call_operand.vmem [shape: f32[8,512], index: 0, kind: input, shape index: {}]   ;;  %s2337_s1 = inlined_call_operand.vmem [shape: f32[32,8], index: 1, kind: input, shape index: {}]   ;;  %s2338_s2 = inlined_call_operand.vmem [shape: f32[32,1], index: 2, kind: input, shape index: {}]   ;;  %s2339_s3 = inlined_call_operand.hbm [shape: f32[9,32,512], index: 3, kind: input, shape index: {}]   ;;  %s2340_s4 = inlined_call_operand.vmem [shape: f32[32,1], index: 4, kind: input, shape index: {}]   ;;  %s2341_s5 = inlined_call_operand.vmem [shape: f32[8,32], index: 5, kind: input, shape index: {}]   ;;  %s2342_s6 = inlined_call_operand.vmem [shape: f32[8,1], index: 6, kind: input, shape index: {}]   ;;  %s2343_s7 = inlined_call_operand.hbm [shape: f32[8,512], index: 7, kind: output, shape index: {}]  }
   0x1   :  { %13 = vsyncpa [#allocation4], 0  ;;  %s1436_s24 = smov [#allocation2]  }
   0x2   :  { %s25_s25 = sshll.u32 %s1436_s24, 4  ;;  %s26_s25 = int_to_ptr.vmem [resolvable:$true] %s25_s25 }
   0x3   :  { %s1400_s26 = scalar_lea.vmem %s26_s25, 18432  ;;  %p1405_p1 = scmp.lt.s32.totalorder %s26_s25, %s26_s25 }
   0x4   :  { %p1401_p0 = scmp.ne.s32.totalorder %s26_s25, %s1400_s26  ;;  %p1406_p2 = scmp.lt.s32.totalorder %s1400_s26, %s1400_s26 }
   0x6   :  { %p1407_p3 = por %p1406_p2, %p1405_p1 }
   0x8   :  { %p1408_p4 = pnand %p1407_p3, %p1401_p0 }
   0xa   :  { %1411 = shalt.err (!%p1408_p4)
}
   0xb   :  { %s1437_s27 = smov 512   ;;  %s1438_s28 = smov 32  }
   0xc   :  { %31 = dma.hbm_to_vmem [thread:$0]  %s2339_s3, 18432, %s26_s25, [#allocation3], %s1437_s27, %s1437_s27, %s1438_s28  }
   0xd   :  { %1432 = dma.done.wait [#allocation3], 18432  }
   0xe   :  { %1433 = vsyncadd [#allocation3], 4294948864  ;;  %v1439_v0 = vmov 0.0   ;;  %v1440_v1 = vmov 0   ;;  %v42_v2 = vld [vmem:[%s2336_s0 + $0x8] sm:$0xff]  ;;  %v44_v3 = vld [vmem:[%s2336_s0 + $0x18] sm:$0xff] }
   0xf   :  { %150 = vmatprep.mubr.f32.mxu0 %v1439_v0  ;;  %239 = vmatprep.mubr.f32.mxu1 %v1439_v0  ;;  %v41_v4 = vld [vmem:[%s2336_s0] sm:$0xff]  ;;  %vm73_vm0 = vcmask 64512   ;;  %v43_v5 = vld [vmem:[%s2336_s0 + $0x10] sm:$0xff]  ;;  %v50_v7 = vld [vmem:[%s2338_s2 + $0x8] sm:$0xff]  ;;  %s1442_s9 = smov 17   ;;  %s1443_s10 = smov 16  }
  0x10   :  { %1387 = vset.pattern.permute.xlu1 %v1440_v1  ;;  %1386 = vset.pattern.permute.xlu0 %v1440_v1  ;;  %v45_v6 = vld [vmem:[%s2337_s1] sm:$0xff]  ;;  %v52_v8 = vld [vmem:[%s2338_s2 + $0x18] sm:$0xff]  ;;  %v46_v9 = vld [vmem:[%s2337_s1 + $0x8] sm:$0xff]  ;;  %s1444_s11 = smov 15   ;;  %s1445_s12 = smov 1   ;;  %vm1193_vm9 = vcmask 261120  }
  0x11   :  { %116 = vmatprep.subr.mxu0 %v42_v2  ;;  %205 = vmatprep.subr.mxu1 %v44_v3  ;;  %v49_v10 = vld [vmem:[%s2338_s2] sm:$0xff]  ;;  %v51_v11 = vld [vmem:[%s2338_s2 + $0x10] sm:$0xff]  ;;  %v1117_v13 = vld [vmem:[%s2340_s4 + $0x18] sm:$0xff]  ;;  %s1446_s13 = smov 127   ;;  %s1447_s3 = smov 112  }
  0x12   :  { %117 = vmatpush1.msra.mxu0 %v41_v4  ;;  %206 = vmatpush1.msra.mxu1 %v43_v5  ;;  %v47_v12 = vld [vmem:[%s2337_s1 + $0x10] sm:$0xff]  ;;  %v48_v14 = vld [vmem:[%s2337_s1 + $0x18] sm:$0xff]  ;;  %s1441_s1 = smov 113   ;;  %s1448_s14 = smov 111  }
  0x13   :  { %1362 = vmatmul.mubr.msk.f32.vlgmr.msra.gmra.mxu0 %vm73_vm0, %v45_v6  ;;  %1366 = vmatmul.mubr.msk.f32.vlgmr.msra.gmra.mxu1 %vm73_vm0, %v45_v6 }
  0x14   :  { %156 = vmatprep.mubr.f32.mxu0 %v1439_v0  ;;  %245 = vmatprep.mubr.f32.mxu1 %v1439_v0 }
  0x15   :  { %60 = vperm.xlu1 %1387, %v50_v7   ;;  %70 = vperm.xlu0 %1386, %v52_v8  }
  0x17   :  { %1363 = vmatmul.mubr.msk.f32.gmra.mxu0 %vm73_vm0, %v46_v9  ;;  %1367 = vmatmul.mubr.msk.f32.gmra.mxu1 %vm73_vm0, %v46_v9 }
  0x18   :  { %162 = vmatprep.mubr.f32.mxu0 %v1439_v0  ;;  %251 = vmatprep.mubr.f32.mxu1 %v1439_v0 }
  0x19   :  { %55 = vperm.xlu1 %1387, %v49_v10   ;;  %65 = vperm.xlu0 %1386, %v51_v11  }
  0x1b   :  { %1364 = vmatmul.mubr.msk.f32.gmra.mxu0 %vm73_vm0, %v47_v12  ;;  %1368 = vmatmul.mubr.msk.f32.gmra.mxu1 %vm73_vm0, %v47_v12 }
  0x1c   :  { %168 = vmatprep.mubr.f32.mxu0 %v1439_v0  ;;  %257 = vmatprep.mubr.f32.mxu1 %v1439_v0 }
  0x1d   :  { %1135 = vperm.xlu0 %1386, %v1117_v13  }
  0x1f   :  { %1365 = vmatmul.mubr.msk.f32.gmra.mxu0 %vm73_vm0, %v48_v14  ;;  %1369 = vmatmul.mubr.msk.f32.gmra.mxu1 %vm73_vm0, %v48_v14 }
  0x20   :  { %1261 = vmatprep.mubr.f32.mxu0 %v1439_v0  ;;  %1332 = vmatprep.mubr.f32.mxu1 %v1439_v0 }
  0x90   :  { %v61_v15 = vpop.permute.xlu1 %60  ;;  %v1632_v49 = vpop.permute.xlu0 %70 }
  0x94   :  { %v56_v16 = vpop.permute.xlu1 %55  ;;  %v66_v51 = vpop.permute.xlu0 %65 }
  0x98   :  { %v1678_v3 = vpop.permute.xlu0 %1135 }
  0xd3   :  { %v152_v17 = vpop.f32.mrf.mxu0  ;;  %v241_v18 = vpop.f32.mrf.mxu1 }
  0xd4   :  { %v153_v19 = vadd.f32 %v152_v17, %v56_v16  ;;  %v242_v20 = vadd.f32 %v241_v18, %v56_v16 }
  0xd5   :  { %v154_v21 = vpop.f32.mrf.mxu0  ;;  %v243_v26 = vpop.f32.mrf.mxu1 }
  0xd6   :  { %v264_v22 = vmax.f32 %v153_v19, 0.0  ;;  %v266_v24 = vmax.f32 %v242_v20, 0.0  ;;  %v155_v25 = vadd.f32 %v154_v21, %v56_v16  ;;  %v244_v29 = vadd.f32 %v243_v26, %v56_v16 }
  0xd7   :  { %v158_v33 = vpop.f32.mrf.mxu0  ;;  %v247_v35 = vpop.f32.mrf.mxu1 }
  0xd8   :  { %v1540_v23 = vmin.f32 %v264_v22, 6.0  ;;  %v1546_v27 = vmin.f32 %v266_v24, 6.0  ;;  %v265_v28 = vmax.f32 %v155_v25, 0.0  ;;  %v267_v31 = vmax.f32 %v244_v29, 0.0 }
  0xd9   :  { %v159_v34 = vadd.f32 %v158_v33, %v61_v15  ;;  %v160_v36 = vpop.f32.mrf.mxu0  ;;  %v248_v38 = vadd.f32 %v247_v35, %v61_v15  ;;  %v249_v40 = vpop.f32.mrf.mxu1 }
  0xda   :  { %820 = vrot.lane.b32.xlu1 %v1540_v23, %s1441_s1  ;;  %296 = vrot.lane.b32.xlu0 %v1540_v23, %s1442_s9  ;;  %2361 = vst [vmem:[#allocation8_spill] sm:$0xff] %v1546_v27  ;;  %v1552_v30 = vmin.f32 %v265_v28, 6.0  ;;  %v1558_v32 = vmin.f32 %v267_v31, 6.0  ;;  %v161_v39 = vadd.f32 %v160_v36, %v61_v15  ;;  %v250_v44 = vadd.f32 %v249_v40, %v61_v15 }
  0xdb   :  { %v268_v37 = vmax.f32 %v159_v34, 0.0  ;;  %v270_v42 = vmax.f32 %v248_v38, 0.0  ;;  %v164_v50 = vpop.f32.mrf.mxu0  ;;  %v253_v53 = vpop.f32.mrf.mxu1 }
  0xdc   :  { %2362 = vst [vmem:[#allocation9_spill] sm:$0xff] %v1552_v30  ;;  %2363 = vst [vmem:[#allocation10_spill] sm:$0xff] %v1558_v32  ;;  %v269_v43 = vmax.f32 %v161_v39, 0.0  ;;  %v271_v47 = vmax.f32 %v250_v44, 0.0  ;;  %v165_v52 = vadd.f32 %v164_v50, %v66_v51  ;;  %v254_v55 = vadd.f32 %v253_v53, %v66_v51 }
  0xdd   :  { %v1592_v41 = vmin.f32 %v268_v37, 6.0  ;;  %v1598_v45 = vmin.f32 %v270_v42, 6.0  ;;  %v166_v54 = vpop.f32.mrf.mxu0  ;;  %v255_v58 = vpop.f32.mrf.mxu1 }
  0xde   :  { %836 = vrot.lane.b32.xlu1 %v1546_v27, %s1441_s1  ;;  %312 = vrot.lane.b32.xlu0 %v1546_v27, %s1442_s9  ;;  %v1600_v46 = vmin.f32 %v269_v43, 6.0  ;;  %v1606_v48 = vmin.f32 %v271_v47, 6.0  ;;  %v272_v56 = vmax.f32 %v165_v52, 0.0  ;;  %v167_v57 = vadd.f32 %v166_v54, %v66_v51 }
  0xdf   :  { %v274_v59 = vmax.f32 %v254_v55, 0.0  ;;  %v256_v62 = vadd.f32 %v255_v58, %v66_v51  ;;  %v170_v16 = vpop.f32.mrf.mxu0  ;;  %v259_v20 = vpop.f32.mrf.mxu1  ;;  %v328_v58 = vlaneseq }
  0xe0   :  { %v1650_v60 = vmin.f32 %v272_v56, 6.0  ;;  %v273_v61 = vmax.f32 %v167_v57, 0.0  ;;  %v171_v17 = vadd.f32 %v170_v16, %v1632_v49  ;;  %v260_v24 = vadd.f32 %v259_v20, %v1632_v49 }
  0xe1   :  { %v1656_v63 = vmin.f32 %v274_v59, 6.0  ;;  %v275_v1 = vmax.f32 %v256_v62, 0.0  ;;  %v172_v21 = vpop.f32.mrf.mxu0  ;;  %v261_v29 = vpop.f32.mrf.mxu1  ;;  %v1802_v62 = vand.u32 127, %v328_v58 }
  0xe2   :  { %304 = vrot.lane.b32.xlu1 %v1552_v30, %s1442_s9  ;;  %379 = vrot.lane.b32.xlu0 %v1540_v23, %s1443_s10  ;;  %v1658_v0 = vmin.f32 %v273_v61, 6.0  ;;  %v276_v22 = vmax.f32 %v171_v17, 0.0  ;;  %v173_v25 = vadd.f32 %v172_v21, %v1632_v49  ;;  %v278_v33 = vmax.f32 %v260_v24, 0.0  ;;  %v352_v17 = vld [vmem:[#allocation2 + $0x28] sm:$0xff]  ;;  %v353_v24 = vld [vmem:[#allocation2 + $0x30] sm:$0xff] }
  0xe3   :  { %v1664_v2 = vmin.f32 %v275_v1, 6.0  ;;  %v262_v35 = vadd.f32 %v261_v29, %v1632_v49  ;;  %vm330_vm1 = vcmp.lt.s32.totalorder %v1802_v62, 17  ;;  %vm411_vm2 = vcmp.lt.s32.totalorder %v1802_v62, 16  ;;  %v434_v21 = vld [vmem:[#allocation2 + $0xa8] sm:$0xff]  ;;  %v433_v29 = vld [vmem:[#allocation2 + $0xa0] sm:$0xff] }
  0xe4   :  { %v1751_v31 = vmin.f32 %v276_v22, 6.0  ;;  %v277_v34 = vmax.f32 %v173_v25, 0.0  ;;  %v1762_v38 = vmin.f32 %v278_v33, 6.0  ;;  %vm509_vm3 = vcmp.lt.s32.totalorder %v1802_v62, 15 }
  0xe5   :  { %v279_v40 = vmax.f32 %v262_v35, 0.0  ;;  %vm607_vm4 = vcmp.lt.s32.totalorder %v1802_v62, 1  ;;  %vm754_vm5 = vcmp.lt.s32.totalorder %v1802_v62, 127  ;;  %vm852_vm6 = vcmp.lt.s32.totalorder %v1802_v62, 113 }
  0xe6   :  { %320 = vrot.lane.b32.xlu1 %v1558_v32, %s1442_s9  ;;  %395 = vrot.lane.b32.xlu0 %v1546_v27, %s1443_s10  ;;  %v1764_v39 = vmin.f32 %v277_v34, 6.0  ;;  %vm950_vm7 = vcmp.lt.s32.totalorder %v1802_v62, 112  ;;  %vm1048_vm8 = vcmp.lt.s32.totalorder %v1802_v62, 111 }
  0xe7   :  { %v1774_v44 = vmin.f32 %v279_v40, 6.0  ;;  %v435_v40 = vld [vmem:[#allocation2 + $0xb0] sm:$0xff] }
  0xea   :  { %387 = vrot.lane.b32.xlu1 %v1552_v30, %s1443_s10  ;;  %477 = vrot.lane.b32.xlu0 %v1540_v23, %s1444_s11 }
  0xee   :  { %403 = vrot.lane.b32.xlu1 %v1558_v32, %s1443_s10  ;;  %493 = vrot.lane.b32.xlu0 %v1546_v27, %s1444_s11 }
  0xf2   :  { %485 = vrot.lane.b32.xlu1 %v1552_v30, %s1444_s11  ;;  %575 = vrot.lane.b32.xlu0 %v1540_v23, %s1445_s12 }
  0xf6   :  { %501 = vrot.lane.b32.xlu1 %v1558_v32, %s1444_s11  ;;  %591 = vrot.lane.b32.xlu0 %v1546_v27, %s1445_s12 }
  0xfa   :  { %583 = vrot.lane.b32.xlu1 %v1552_v30, %s1445_s12  ;;  %722 = vrot.lane.b32.xlu0 %v1540_v23, %s1446_s13 }
  0xfe   :  { %599 = vrot.lane.b32.xlu1 %v1558_v32, %s1445_s12  ;;  %738 = vrot.lane.b32.xlu0 %v1546_v27, %s1446_s13 }
 0x102   :  { %730 = vrot.lane.b32.xlu1 %v1552_v30, %s1446_s13  ;;  %828 = vrot.lane.b32.xlu0 %v1552_v30, %s1441_s1 }
 0x106   :  { %746 = vrot.lane.b32.xlu1 %v1558_v32, %s1446_s13  ;;  %298 = vrot.lane.b32.xlu0 %v1592_v41, %s1442_s9 }
 0x10a   :  { %306 = vrot.lane.b32.xlu1 %v1600_v46, %s1442_s9  ;;  %314 = vrot.lane.b32.xlu0 %v1598_v45, %s1442_s9 }
 0x10e   :  { %322 = vrot.lane.b32.xlu1 %v1606_v48, %s1442_s9  ;;  %381 = vrot.lane.b32.xlu0 %v1592_v41, %s1443_s10 }
 0x112   :  { %389 = vrot.lane.b32.xlu1 %v1600_v46, %s1443_s10  ;;  %397 = vrot.lane.b32.xlu0 %v1598_v45, %s1443_s10 }
 0x116   :  { %405 = vrot.lane.b32.xlu1 %v1606_v48, %s1443_s10  ;;  %479 = vrot.lane.b32.xlu0 %v1592_v41, %s1444_s11 }
 0x11a   :  { %487 = vrot.lane.b32.xlu1 %v1600_v46, %s1444_s11  ;;  %495 = vrot.lane.b32.xlu0 %v1598_v45, %s1444_s11 }
 0x11e   :  { %503 = vrot.lane.b32.xlu1 %v1606_v48, %s1444_s11  ;;  %577 = vrot.lane.b32.xlu0 %v1592_v41, %s1445_s12 }
 0x122   :  { %585 = vrot.lane.b32.xlu1 %v1600_v46, %s1445_s12  ;;  %593 = vrot.lane.b32.xlu0 %v1598_v45, %s1445_s12 }
 0x126   :  { %601 = vrot.lane.b32.xlu1 %v1606_v48, %s1445_s12  ;;  %724 = vrot.lane.b32.xlu0 %v1592_v41, %s1446_s13 }
 0x12a   :  { %732 = vrot.lane.b32.xlu1 %v1600_v46, %s1446_s13  ;;  %740 = vrot.lane.b32.xlu0 %v1598_v45, %s1446_s13 }
 0x12e   :  { %748 = vrot.lane.b32.xlu1 %v1606_v48, %s1446_s13  ;;  %822 = vrot.lane.b32.xlu0 %v1592_v41, %s1441_s1 }
 0x132   :  { %830 = vrot.lane.b32.xlu1 %v1600_v46, %s1441_s1  ;;  %838 = vrot.lane.b32.xlu0 %v1598_v45, %s1441_s1 }
 0x136   :  { %846 = vrot.lane.b32.xlu1 %v1606_v48, %s1441_s1  ;;  %300 = vrot.lane.b32.xlu0 %v1650_v60, %s1442_s9 }
 0x13a   :  { %308 = vrot.lane.b32.xlu1 %v1658_v0, %s1442_s9  ;;  %316 = vrot.lane.b32.xlu0 %v1656_v63, %s1442_s9 }
 0x13e   :  { %324 = vrot.lane.b32.xlu1 %v1664_v2, %s1442_s9  ;;  %383 = vrot.lane.b32.xlu0 %v1650_v60, %s1443_s10 }
 0x142   :  { %391 = vrot.lane.b32.xlu1 %v1658_v0, %s1443_s10  ;;  %399 = vrot.lane.b32.xlu0 %v1656_v63, %s1443_s10 }
 0x146   :  { %407 = vrot.lane.b32.xlu1 %v1664_v2, %s1443_s10  ;;  %481 = vrot.lane.b32.xlu0 %v1650_v60, %s1444_s11 }
 0x14a   :  { %489 = vrot.lane.b32.xlu1 %v1658_v0, %s1444_s11  ;;  %497 = vrot.lane.b32.xlu0 %v1656_v63, %s1444_s11 }
 0x14c   :  { %v1684_v4 = vpop.permute.xlu1 %820  ;;  %v1686_v5 = vpop.permute.xlu0 %296 }
 0x14d   :  { %2364 = vst [vmem:[#allocation11_spill] sm:$0xff] %v1684_v4 }
 0x14e   :  { %505 = vrot.lane.b32.xlu1 %v1664_v2, %s1444_s11  ;;  %579 = vrot.lane.b32.xlu0 %v1650_v60, %s1445_s12 }
 0x150   :  { %v1692_v6 = vpop.permute.xlu1 %836  ;;  %v1694_v7 = vpop.permute.xlu0 %312 }
 0x151   :  { %2365 = vst [vmem:[#allocation12_spill] sm:$0xff] %v1692_v6  ;;  %2366 = vst [vmem:[#allocation13_spill] sm:$0xff] %v1694_v7 }
 0x152   :  { %587 = vrot.lane.b32.xlu1 %v1658_v0, %s1445_s12  ;;  %595 = vrot.lane.b32.xlu0 %v1656_v63, %s1445_s12 }
 0x154   :  { %v1700_v8 = vpop.permute.xlu1 %304  ;;  %v1702_v9 = vpop.permute.xlu0 %379 }
 0x156   :  { %603 = vrot.lane.b32.xlu1 %v1664_v2, %s1445_s12  ;;  %726 = vrot.lane.b32.xlu0 %v1650_v60, %s1446_s13 }
 0x158   :  { %v1708_v10 = vpop.permute.xlu1 %320  ;;  %v1710_v11 = vpop.permute.xlu0 %395 }
 0x15a   :  { %734 = vrot.lane.b32.xlu1 %v1658_v0, %s1446_s13  ;;  %742 = vrot.lane.b32.xlu0 %v1656_v63, %s1446_s13 }
 0x15c   :  { %v1716_v12 = vpop.permute.xlu1 %387  ;;  %v1718_v13 = vpop.permute.xlu0 %477 }
 0x15e   :  { %750 = vrot.lane.b32.xlu1 %v1664_v2, %s1446_s13  ;;  %824 = vrot.lane.b32.xlu0 %v1650_v60, %s1441_s1 }
 0x160   :  { %v1724_v14 = vpop.permute.xlu1 %403  ;;  %v1726_v15 = vpop.permute.xlu0 %493 }
 0x161   :  { %2367 = vst [vmem:[#allocation14_spill] sm:$0xff] %v1726_v15  ;;  %v354_v15 = vld [vmem:[#allocation2 + $0x38] sm:$0xff] }
 0x162   :  { %832 = vrot.lane.b32.xlu1 %v1658_v0, %s1441_s1  ;;  %840 = vrot.lane.b32.xlu0 %v1656_v63, %s1441_s1 }
 0x164   :  { %v1733_v18 = vpop.permute.xlu1 %485  ;;  %v1735_v19 = vpop.permute.xlu0 %575 }
 0x165   :  { %2368 = vst [vmem:[#allocation15_spill] sm:$0xff] %v1733_v18  ;;  %2369 = vst [vmem:[#allocation16_spill] sm:$0xff] %v1735_v19 }
 0x166   :  { %848 = vrot.lane.b32.xlu1 %v1664_v2, %s1441_s1  ;;  %922 = vrot.lane.b32.xlu0 %v1650_v60, %s1447_s3 }
 0x168   :  { %v1743_v26 = vpop.permute.xlu1 %501  ;;  %v1745_v28 = vpop.permute.xlu0 %591 }
 0x169   :  { %2370 = vst [vmem:[#allocation17_spill] sm:$0xff] %v1745_v28 }
 0x16a   :  { %930 = vrot.lane.b32.xlu1 %v1658_v0, %s1447_s3  ;;  %938 = vrot.lane.b32.xlu0 %v1656_v63, %s1447_s3 }
 0x16c   :  { %v1754_v36 = vpop.permute.xlu1 %583  ;;  %v1756_v37 = vpop.permute.xlu0 %722 }
 0x16d   :  { %2371 = vst [vmem:[#allocation18_spill] sm:$0xff] %v1754_v36  ;;  %2372 = vst [vmem:[#allocation19_spill] sm:$0xff] %v1756_v37  ;;  %v534_v36 = vld [vmem:[#allocation2 + $0x138] sm:$0xff] }
 0x16e   :  { %946 = vrot.lane.b32.xlu1 %v1664_v2, %s1447_s3  ;;  %302 = vrot.lane.b32.xlu0 %v1751_v31, %s1442_s9 }
 0x170   :  { %v1766_v42 = vpop.permute.xlu1 %599  ;;  %v1768_v43 = vpop.permute.xlu0 %738 }
 0x171   :  { %2373 = vst [vmem:[#allocation20_spill] sm:$0xff] %v1766_v42  ;;  %2374 = vst [vmem:[#allocation21_spill] sm:$0xff] %v1768_v43  ;;  %v351_v43 = vld [vmem:[#allocation2 + $0x20] sm:$0xff] }
 0x172   :  { %310 = vrot.lane.b32.xlu1 %v1764_v39, %s1442_s9  ;;  %318 = vrot.lane.b32.xlu0 %v1762_v38, %s1442_s9 }
 0x174   :  { %v1776_v47 = vpop.permute.xlu1 %730  ;;  %v1778_v49 = vpop.permute.xlu0 %828 }
 0x175   :  { %2375 = vst [vmem:[#allocation22_spill] sm:$0xff] %v1776_v47  ;;  %2376 = vst [vmem:[#allocation23_spill] sm:$0xff] %v1778_v49  ;;  %v532_v49 = vld [vmem:[#allocation2 + $0x128] sm:$0xff]  ;;  %v531_v47 = vld [vmem:[#allocation2 + $0x120] sm:$0xff] }
 0x176   :  { %326 = vrot.lane.b32.xlu1 %v1774_v44, %s1442_s9  ;;  %385 = vrot.lane.b32.xlu0 %v1751_v31, %s1443_s10 }
 0x178   :  { %v1784_v50 = vpop.permute.xlu1 %746  ;;  %v299_v51 = vpop.permute.xlu0 %298 }
 0x179   :  { %2377 = vst [vmem:[#allocation24_spill] sm:$0xff] %v1784_v50  ;;  %v436_v50 = vld [vmem:[#allocation2 + $0xb8] sm:$0xff] }
 0x17a   :  { %393 = vrot.lane.b32.xlu1 %v1764_v39, %s1443_s10  ;;  %401 = vrot.lane.b32.xlu0 %v1762_v38, %s1443_s10 }
 0x17c   :  { %v307_v52 = vpop.permute.xlu1 %306  ;;  %v315_v53 = vpop.permute.xlu0 %314 }
 0x17d   :  { %v340_v20 = vsel %vm330_vm1, %v299_v51, %v307_v52  ;;  %v336_v25 = vsel %vm330_vm1, %v307_v52, %v315_v53 }
 0x17e   :  { %409 = vrot.lane.b32.xlu1 %v1774_v44, %s1443_s10  ;;  %483 = vrot.lane.b32.xlu0 %v1751_v31, %s1444_s11  ;;  %v368_v6 = vmul.f32 %v352_v17, %v340_v20 }
 0x180   :  { %v323_v54 = vpop.permute.xlu1 %322  ;;  %v382_v55 = vpop.permute.xlu0 %381 }
 0x182   :  { %491 = vrot.lane.b32.xlu1 %v1764_v39, %s1444_s11  ;;  %499 = vrot.lane.b32.xlu0 %v1762_v38, %s1444_s11 }
 0x184   :  { %v390_v56 = vpop.permute.xlu1 %389  ;;  %v398_v57 = vpop.permute.xlu0 %397 }
 0x185   :  { %v421_v22 = vsel %vm411_vm2, %v382_v55, %v390_v56  ;;  %v417_v58 = vsel %vm411_vm2, %v390_v56, %v398_v57  ;;  %v369_v56 = vmul.f32 %v353_v24, %v336_v25 }
 0x186   :  { %507 = vrot.lane.b32.xlu1 %v1774_v44, %s1444_s11  ;;  %581 = vrot.lane.b32.xlu0 %v1751_v31, %s1445_s12  ;;  %v450_v37 = vmul.f32 %v434_v21, %v421_v22  ;;  %v451_v20 = vmul.f32 %v435_v40, %v417_v58  ;;  %v533_v22 = vld [vmem:[#allocation2 + $0x130] sm:$0xff] }
 0x188   :  { %v406_v59 = vpop.permute.xlu1 %405  ;;  %v480_v61 = vpop.permute.xlu0 %479 }
 0x189   :  { %v425_v33 = vsel %vm411_vm2, %v406_v59, %v382_v55  ;;  %v413_v4 = vsel %vm411_vm2, %v398_v57, %v406_v59  ;;  %v344_v55 = vsel %vm330_vm1, %v323_v54, %v299_v51  ;;  %v332_v57 = vsel %vm330_vm1, %v315_v53, %v323_v54  ;;  %v630_v51 = vld [vmem:[#allocation2 + $0x1a8] sm:$0xff] }
 0x18a   :  { %589 = vrot.lane.b32.xlu1 %v1764_v39, %s1445_s12  ;;  %597 = vrot.lane.b32.xlu0 %v1762_v38, %s1445_s12  ;;  %v449_v59 = vmul.f32 %v433_v29, %v425_v33  ;;  %v452_v21 = vmul.f32 %v436_v50, %v413_v4  ;;  %v367_v19 = vmul.f32 %v351_v43, %v344_v55  ;;  %v631_v4 = vld [vmem:[#allocation2 + $0x1b0] sm:$0xff]  ;;  %v632_v43 = vld [vmem:[#allocation2 + $0x1b8] sm:$0xff]  ;;  %v679_v55 = vld [vmem:[#allocation2 + $0x228] sm:$0xff] }
 0x18b   :  { %v370_v33 = vmul.f32 %v354_v15, %v332_v57  ;;  %v678_v15 = vld [vmem:[#allocation2 + $0x220] sm:$0xff] }
 0x18c   :  { %v488_v1 = vpop.permute.xlu1 %487  ;;  %v496_v16 = vpop.permute.xlu0 %495 }
 0x18d   :  { %v519_v52 = vsel %vm509_vm3, %v480_v61, %v488_v1  ;;  %v515_v24 = vsel %vm509_vm3, %v488_v1, %v496_v16  ;;  %v468_v1 = vadd.f32 %v452_v21, %v370_v33  ;;  %v776_v21 = vld [vmem:[#allocation2 + $0x2a0] sm:$0xff]  ;;  %v681_v33 = vld [vmem:[#allocation2 + $0x238] sm:$0xff] }
 0x18e   :  { %605 = vrot.lane.b32.xlu1 %v1774_v44, %s1445_s12  ;;  %728 = vrot.lane.b32.xlu0 %v1751_v31, %s1446_s13  ;;  %v549_v50 = vmul.f32 %v533_v22, %v515_v24 }
 0x190   :  { %v504_v34 = vpop.permute.xlu1 %503  ;;  %v578_v35 = vpop.permute.xlu0 %577 }
 0x191   :  { %v523_v28 = vsel %vm509_vm3, %v504_v34, %v480_v61  ;;  %v511_v17 = vsel %vm509_vm3, %v496_v16, %v504_v34  ;;  %v548_v61 = vmul.f32 %v532_v49, %v519_v52  ;;  %v466_v34 = vadd.f32 %v450_v37, %v368_v6 }
 0x192   :  { %736 = vrot.lane.b32.xlu1 %v1764_v39, %s1446_s13  ;;  %744 = vrot.lane.b32.xlu0 %v1762_v38, %s1446_s13  ;;  %v547_v53 = vmul.f32 %v531_v47, %v523_v28  ;;  %v550_v18 = vmul.f32 %v534_v36, %v511_v17  ;;  %v465_v49 = vadd.f32 %v449_v59, %v367_v19  ;;  %v629_v28 = vld [vmem:[#allocation2 + $0x1a0] sm:$0xff] }
 0x193   :  { %v467_v47 = vadd.f32 %v451_v20, %v369_v56  ;;  %v564_v16 = vadd.f32 %v548_v61, %v466_v34  ;;  %v694_v20 = vmul.f32 %v678_v15, %v1592_v41  ;;  %v777_v61 = vld [vmem:[#allocation2 + $0x2a8] sm:$0xff] }
 0x194   :  { %v586_v25 = vpop.permute.xlu1 %585  ;;  %v594_v42 = vpop.permute.xlu0 %593  ;;  %v563_v6 = vadd.f32 %v547_v53, %v465_v49  ;;  %v566_v57 = vadd.f32 %v550_v18, %v468_v1  ;;  %v695_v18 = vmul.f32 %v679_v55, %v1600_v46 }
 0x195   :  { %v617_v54 = vsel %vm607_vm4, %v578_v35, %v586_v25  ;;  %v613_v29 = vsel %vm607_vm4, %v586_v25, %v594_v42  ;;  %v565_v56 = vadd.f32 %v549_v50, %v467_v47  ;;  %v778_v50 = vld [vmem:[#allocation2 + $0x2b0] sm:$0xff] }
 0x196   :  { %v646_v40 = vmul.f32 %v630_v51, %v617_v54  ;;  %752 = vrot.lane.b32.xlu1 %v1774_v44, %s1446_s13  ;;  %826 = vrot.lane.b32.xlu0 %v1751_v31, %s1441_s1  ;;  %v647_v36 = vmul.f32 %v631_v4, %v613_v29  ;;  %v680_v29 = vld [vmem:[#allocation2 + $0x230] sm:$0xff] }
 0x197   :  { %v696_v1 = vmul.f32 %v680_v29, %v1598_v45 }
 0x198   :  { %v602_v58 = vpop.permute.xlu1 %601  ;;  %v725_v52 = vpop.permute.xlu0 %724  ;;  %v662_v59 = vadd.f32 %v646_v40, %v564_v16  ;;  %v663_v25 = vadd.f32 %v647_v36, %v565_v56  ;;  %v697_v16 = vmul.f32 %v681_v33, %v1606_v48 }
 0x199   :  { %v609_v37 = vsel %vm607_vm4, %v594_v42, %v602_v58  ;;  %v621_v19 = vsel %vm607_vm4, %v602_v58, %v578_v35 }
 0x19a   :  { %v645_v17 = vmul.f32 %v629_v28, %v621_v19  ;;  %v648_v51 = vmul.f32 %v632_v43, %v609_v37  ;;  %834 = vrot.lane.b32.xlu1 %v1764_v39, %s1441_s1  ;;  %842 = vrot.lane.b32.xlu0 %v1762_v38, %s1441_s1  ;;  %v711_v4 = vadd.f32 %v695_v18, %v662_v59  ;;  %v779_v28 = vld [vmem:[#allocation2 + $0x2b8] sm:$0xff]  ;;  %v874_v59 = vld [vmem:[#allocation2 + $0x320] sm:$0xff] }
 0x19b   :  { %v712_v37 = vadd.f32 %v696_v1, %v663_v25  ;;  %v877_v18 = vld [vmem:[#allocation2 + $0x338] sm:$0xff] }
 0x19c   :  { %v661_v42 = vadd.f32 %v645_v17, %v563_v6  ;;  %v664_v35 = vadd.f32 %v648_v51, %v566_v57  ;;  %v733_v22 = vpop.permute.xlu1 %732  ;;  %v741_v24 = vpop.permute.xlu0 %740  ;;  %v875_v17 = vld [vmem:[#allocation2 + $0x328] sm:$0xff] }
 0x19d   :  { %v764_v53 = vsel %vm754_vm5, %v725_v52, %v733_v22  ;;  %v760_v54 = vsel %vm754_vm5, %v733_v22, %v741_v24  ;;  %v876_v22 = vld [vmem:[#allocation2 + $0x330] sm:$0xff] }
 0x19e   :  { %v710_v34 = vadd.f32 %v694_v20, %v661_v42  ;;  %v792_v40 = vmul.f32 %v776_v21, %v764_v53  ;;  %v793_v49 = vmul.f32 %v777_v61, %v760_v54  ;;  %850 = vrot.lane.b32.xlu1 %v1774_v44, %s1441_s1  ;;  %924 = vrot.lane.b32.xlu0 %v1751_v31, %s1447_s3 }
 0x19f   :  { %v713_v19 = vadd.f32 %v697_v16, %v664_v35 }
 0x1a0   :  { %v808_v43 = vadd.f32 %v792_v40, %v710_v34  ;;  %v809_v47 = vadd.f32 %v793_v49, %v711_v4  ;;  %v749_v58 = vpop.permute.xlu1 %748  ;;  %v823_v15 = vpop.permute.xlu0 %822 }
 0x1a1   :  { %v756_v6 = vsel %vm754_vm5, %v741_v24, %v749_v58  ;;  %v768_v36 = vsel %vm754_vm5, %v749_v58, %v725_v52 }
 0x1a2   :  { %v794_v55 = vmul.f32 %v778_v50, %v756_v6  ;;  %v795_v57 = vmul.f32 %v779_v28, %v768_v36  ;;  %932 = vrot.lane.b32.xlu1 %v1764_v39, %s1447_s3  ;;  %940 = vrot.lane.b32.xlu0 %v1762_v38, %s1447_s3  ;;  %v356_v6 = vld [vmem:[#allocation2 + $0x48] sm:$0xff]  ;;  %v357_v36 = vld [vmem:[#allocation2 + $0x50] sm:$0xff] }
 0x1a4   :  { %v810_v51 = vadd.f32 %v794_v55, %v712_v37  ;;  %v811_v56 = vadd.f32 %v795_v57, %v713_v19  ;;  %v831_v20 = vpop.permute.xlu1 %830  ;;  %v839_v21 = vpop.permute.xlu0 %838  ;;  %v438_v37 = vld [vmem:[#allocation2 + $0xc8] sm:$0xff]  ;;  %v439_v19 = vld [vmem:[#allocation2 + $0xd0] sm:$0xff] }
 0x1a5   :  { %v862_v52 = vsel %vm852_vm6, %v823_v15, %v831_v20  ;;  %v858_v61 = vsel %vm852_vm6, %v831_v20, %v839_v21  ;;  %v355_v20 = vld [vmem:[#allocation2 + $0x40] sm:$0xff] }
 0x1a6   :  { %v890_v42 = vmul.f32 %v874_v59, %v862_v52  ;;  %v891_v35 = vmul.f32 %v875_v17, %v858_v61  ;;  %948 = vrot.lane.b32.xlu1 %v1774_v44, %s1447_s3  ;;  %1022 = vrot.lane.b32.xlu0 %v1751_v31, %s1448_s14  ;;  %v358_v61 = vld [vmem:[#allocation2 + $0x58] sm:$0xff] }
 0x1a8   :  { %v1890_v24 = vadd.f32 %v890_v42, %v808_v43  ;;  %v1892_v25 = vadd.f32 %v891_v35, %v809_v47  ;;  %v847_v53 = vpop.permute.xlu1 %846  ;;  %v301_v54 = vpop.permute.xlu0 %300  ;;  %v437_v42 = vld [vmem:[#allocation2 + $0xc0] sm:$0xff]  ;;  %v440_v35 = vld [vmem:[#allocation2 + $0xd8] sm:$0xff] }
 0x1a9   :  { %v854_v29 = vsel %vm852_vm6, %v839_v21, %v847_v53  ;;  %v866_v33 = vsel %vm852_vm6, %v847_v53, %v823_v15 }
 0x1aa   :  { %2378 = vst [vmem:[#allocation25_spill] sm:$0xff] %v1890_v24  ;;  %2379 = vst [vmem:[#allocation26_spill] sm:$0xff] %v1892_v25  ;;  %v892_v34 = vmul.f32 %v876_v22, %v854_v29  ;;  %v893_v40 = vmul.f32 %v877_v18, %v866_v33  ;;  %1030 = vrot.lane.b32.xlu1 %v1764_v39, %s1448_s14  ;;  %1038 = vrot.lane.b32.xlu0 %v1762_v38, %s1448_s14 }
 0x1ac   :  { %v1902_v4 = vadd.f32 %v892_v34, %v810_v51  ;;  %v1904_v49 = vadd.f32 %v893_v40, %v811_v56  ;;  %v309_v50 = vpop.permute.xlu1 %308  ;;  %v317_v28 = vpop.permute.xlu0 %316 }
 0x1ad   :  { %v341_v43 = vsel %vm330_vm1, %v301_v54, %v309_v50  ;;  %v337_v47 = vsel %vm330_vm1, %v309_v50, %v317_v28 }
 0x1ae   :  { %2380 = vst [vmem:[#allocation27_spill] sm:$0xff] %v1902_v4  ;;  %2381 = vst [vmem:[#allocation28_spill] sm:$0xff] %v1904_v49  ;;  %1046 = vrot.lane.b32.xlu1 %v1774_v44, %s1448_s14  ;;  %844 = vrot.lane.b32.xlu0 %v1558_v32, %s1441_s1  ;;  %v372_v51 = vmul.f32 %v356_v6, %v341_v43  ;;  %v373_v56 = vmul.f32 %v357_v36, %v337_v47  ;;  %v536_v43 = vld [vmem:[#allocation2 + $0x148] sm:$0xff]  ;;  %v537_v47 = vld [vmem:[#allocation2 + $0x150] sm:$0xff] }
 0x1af   :  { %v444_v49 = vld [vmem:[#allocation2 + $0xf8] sm:$0xff] }
 0x1b0   :  { %v325_v1 = vpop.permute.xlu1 %324  ;;  %v384_v16 = vpop.permute.xlu0 %383 }
 0x1b1   :  { %v333_v58 = vsel %vm330_vm1, %v317_v28, %v325_v1  ;;  %v345_v15 = vsel %vm330_vm1, %v325_v1, %v301_v54 }
 0x1b2   :  { %920 = vrot.lane.b32.xlu1 %v1592_v41, %s1447_s3  ;;  %928 = vrot.lane.b32.xlu0 %v1600_v46, %s1447_s3  ;;  %v371_v34 = vmul.f32 %v355_v20, %v345_v15  ;;  %v374_v40 = vmul.f32 %v358_v61, %v333_v58 }
 0x1b4   :  { %v392_v55 = vpop.permute.xlu1 %391  ;;  %v400_v57 = vpop.permute.xlu0 %399 }
 0x1b5   :  { %v422_v59 = vsel %vm411_vm2, %v384_v16, %v392_v55  ;;  %v418_v17 = vsel %vm411_vm2, %v392_v55, %v400_v57  ;;  %v535_v55 = vld [vmem:[#allocation2 + $0x140] sm:$0xff] }
 0x1b6   :  { %v454_v21 = vmul.f32 %v438_v37, %v422_v59  ;;  %v455_v52 = vmul.f32 %v439_v19, %v418_v17  ;;  %936 = vrot.lane.b32.xlu1 %v1598_v45, %s1447_s3  ;;  %944 = vrot.lane.b32.xlu0 %v1606_v48, %s1447_s3  ;;  %v1116_v59 = vld [vmem:[%s2340_s4 + $0x10] sm:$0xff] }
 0x1b8   :  { %v470_v22 = vadd.f32 %v454_v21, %v372_v51  ;;  %v471_v18 = vadd.f32 %v455_v52, %v373_v56  ;;  %v408_v53 = vpop.permute.xlu1 %407  ;;  %v482_v54 = vpop.permute.xlu0 %481 }
 0x1b9   :  { %v414_v29 = vsel %vm411_vm2, %v400_v57, %v408_v53  ;;  %v426_v33 = vsel %vm411_vm2, %v408_v53, %v384_v16  ;;  %v538_v57 = vld [vmem:[#allocation2 + $0x158] sm:$0xff]  ;;  %v635_v53 = vld [vmem:[#allocation2 + $0x1d0] sm:$0xff] }
 0x1ba   :  { %v453_v50 = vmul.f32 %v437_v42, %v426_v33  ;;  %v456_v28 = vmul.f32 %v440_v35, %v414_v29  ;;  %1020 = vrot.lane.b32.xlu1 %v1650_v60, %s1448_s14  ;;  %1028 = vrot.lane.b32.xlu0 %v1658_v0, %s1448_s14  ;;  %v634_v35 = vld [vmem:[#allocation2 + $0x1c8] sm:$0xff] }
 0x1bc   :  { %v469_v1 = vadd.f32 %v453_v50, %v371_v34  ;;  %v472_v6 = vadd.f32 %v456_v28, %v374_v40  ;;  %v490_v36 = vpop.permute.xlu1 %489  ;;  %v498_v37 = vpop.permute.xlu0 %497  ;;  %v633_v28 = vld [vmem:[#allocation2 + $0x1c0] sm:$0xff] }
 0x1bd   :  { %v520_v19 = vsel %vm509_vm3, %v482_v54, %v490_v36  ;;  %v516_v16 = vsel %vm509_vm3, %v490_v36, %v498_v37 }
 0x1be   :  { %v552_v58 = vmul.f32 %v536_v43, %v520_v19  ;;  %v553_v15 = vmul.f32 %v537_v47, %v516_v16  ;;  %1036 = vrot.lane.b32.xlu1 %v1656_v63, %s1448_s14  ;;  %1044 = vrot.lane.b32.xlu0 %v1664_v2, %s1448_s14  ;;  %v636_v43 = vld [vmem:[#allocation2 + $0x1d8] sm:$0xff]  ;;  %v682_v16 = vld [vmem:[#allocation2 + $0x240] sm:$0xff] }
 0x1c0   :  { %v568_v17 = vadd.f32 %v552_v58, %v470_v22  ;;  %v569_v51 = vadd.f32 %v553_v15, %v471_v18  ;;  %v506_v56 = vpop.permute.xlu1 %505  ;;  %v580_v20 = vpop.permute.xlu0 %579  ;;  %v683_v58 = vld [vmem:[#allocation2 + $0x248] sm:$0xff] }
 0x1c1   :  { %v512_v21 = vsel %vm509_vm3, %v498_v37, %v506_v56  ;;  %v524_v52 = vsel %vm509_vm3, %v506_v56, %v482_v54  ;;  %v698_v56 = vmul.f32 %v682_v16, %v1650_v60  ;;  %v782_v60 = vld [vmem:[#allocation2 + $0x2d0] sm:$0xff] }
 0x1c2   :  { %v551_v61 = vmul.f32 %v535_v55, %v524_v52  ;;  %v554_v42 = vmul.f32 %v538_v57, %v512_v21  ;;  %1130 = vperm.xlu1 %1387, %v1116_v59   ;;  %918 = vrot.lane.b32.xlu0 %v1540_v23, %s1447_s3  ;;  %v780_v57 = vld [vmem:[#allocation2 + $0x2c0] sm:$0xff]  ;;  %v781_v59 = vld [vmem:[#allocation2 + $0x2c8] sm:$0xff]  ;;  %v699_v52 = vmul.f32 %v683_v58, %v1658_v0  ;;  %v783_v0 = vld [vmem:[#allocation2 + $0x2d8] sm:$0xff] }
 0x1c4   :  { %v567_v29 = vadd.f32 %v551_v61, %v469_v1  ;;  %v570_v33 = vadd.f32 %v554_v42, %v472_v6  ;;  %v588_v22 = vpop.permute.xlu1 %587  ;;  %v596_v18 = vpop.permute.xlu0 %595 }
 0x1c5   :  { %v618_v34 = vsel %vm607_vm4, %v580_v20, %v588_v22  ;;  %v614_v40 = vsel %vm607_vm4, %v588_v22, %v596_v18 }
 0x1c6   :  { %v650_v50 = vmul.f32 %v634_v35, %v618_v34  ;;  %v651_v54 = vmul.f32 %v635_v53, %v614_v40  ;;  %926 = vrot.lane.b32.xlu1 %v1552_v30, %s1447_s3  ;;  %934 = vrot.lane.b32.xlu0 %v1546_v27, %s1447_s3  ;;  %v684_v35 = vld [vmem:[#allocation2 + $0x250] sm:$0xff]  ;;  %v685_v53 = vld [vmem:[#allocation2 + $0x258] sm:$0xff] }
 0x1c7   :  { %v700_v40 = vmul.f32 %v684_v35, %v1656_v63  ;;  %v878_v63 = vld [vmem:[#allocation2 + $0x340] sm:$0xff] }
 0x1c8   :  { %v666_v47 = vadd.f32 %v650_v50, %v568_v17  ;;  %v667_v1 = vadd.f32 %v651_v54, %v569_v51  ;;  %v604_v6 = vpop.permute.xlu1 %603  ;;  %v727_v36 = vpop.permute.xlu0 %726  ;;  %v701_v50 = vmul.f32 %v685_v53, %v1664_v2  ;;  %v879_v2 = vld [vmem:[#allocation2 + $0x348] sm:$0xff]  ;;  %v976_v53 = vld [vmem:[#allocation2 + $0x3c0] sm:$0xff] }
 0x1c9   :  { %v610_v37 = vsel %vm607_vm4, %v596_v18, %v604_v6  ;;  %v622_v19 = vsel %vm607_vm4, %v604_v6, %v580_v20 }
 0x1ca   :  { %v649_v15 = vmul.f32 %v633_v28, %v622_v19  ;;  %v652_v55 = vmul.f32 %v636_v43, %v610_v37  ;;  %942 = vrot.lane.b32.xlu1 %v1558_v32, %s1447_s3  ;;  %1018 = vrot.lane.b32.xlu0 %v1592_v41, %s1448_s14  ;;  %v715_v18 = vadd.f32 %v699_v52, %v666_v47  ;;  %v1115_v43 = vld [vmem:[%s2340_s4 + $0x8] sm:$0xff] }
 0x1cb   :  { %v716_v47 = vadd.f32 %v700_v40, %v667_v1 }
 0x1cc   :  { %v665_v17 = vadd.f32 %v649_v15, %v567_v29  ;;  %v668_v51 = vadd.f32 %v652_v55, %v570_v33  ;;  %v735_v21 = vpop.permute.xlu1 %734  ;;  %v743_v20 = vpop.permute.xlu0 %742 }
 0x1cd   :  { %v765_v61 = vsel %vm754_vm5, %v727_v36, %v735_v21  ;;  %v761_v42 = vsel %vm754_vm5, %v735_v21, %v743_v20 }
 0x1ce   :  { %v714_v22 = vadd.f32 %v698_v56, %v665_v17  ;;  %v796_v41 = vmul.f32 %v780_v57, %v765_v61  ;;  %v797_v34 = vmul.f32 %v781_v59, %v761_v42  ;;  %1026 = vrot.lane.b32.xlu1 %v1600_v46, %s1448_s14  ;;  %1034 = vrot.lane.b32.xlu0 %v1598_v45, %s1448_s14  ;;  %v881_v17 = vld [vmem:[#allocation2 + $0x358] sm:$0xff] }
 0x1cf   :  { %v717_v6 = vadd.f32 %v701_v50, %v668_v51 }
 0x1d0   :  { %v812_v29 = vadd.f32 %v796_v41, %v714_v22  ;;  %v813_v33 = vadd.f32 %v797_v34, %v715_v18  ;;  %v751_v54 = vpop.permute.xlu1 %750  ;;  %v825_v28 = vpop.permute.xlu0 %824  ;;  %v977_v22 = vld [vmem:[#allocation2 + $0x3c8] sm:$0xff]  ;;  %v1114_v41 = vld [vmem:[%s2340_s4] sm:$0xff] }
 0x1d1   :  { %v757_v46 = vsel %vm754_vm5, %v743_v20, %v751_v54  ;;  %v769_v45 = vsel %vm754_vm5, %v751_v54, %v727_v36 }
 0x1d2   :  { %v798_v37 = vmul.f32 %v782_v60, %v757_v46  ;;  %v799_v19 = vmul.f32 %v783_v0, %v769_v45  ;;  %1042 = vrot.lane.b32.xlu1 %v1606_v48, %s1448_s14  ;;  %1125 = vperm.xlu0 %1386, %v1115_v43   ;;  %v880_v48 = vld [vmem:[#allocation2 + $0x350] sm:$0xff]  ;;  %v979_v43 = vld [vmem:[#allocation2 + $0x3d8] sm:$0xff] }
 0x1d4   :  { %v814_v16 = vadd.f32 %v798_v37, %v716_v47  ;;  %v815_v58 = vadd.f32 %v799_v19, %v717_v6  ;;  %v833_v15 = vpop.permute.xlu1 %832  ;;  %v841_v55 = vpop.permute.xlu0 %840 }
 0x1d5   :  { %v863_v57 = vsel %vm852_vm6, %v825_v28, %v833_v15  ;;  %v859_v36 = vsel %vm852_vm6, %v833_v15, %v841_v55 }
 0x1d6   :  { %v894_v1 = vmul.f32 %v878_v63, %v863_v57  ;;  %v895_v59 = vmul.f32 %v879_v2, %v859_v36  ;;  %1016 = vrot.lane.b32.xlu1 %v1540_v23, %s1448_s14  ;;  %1024 = vrot.lane.b32.xlu0 %v1552_v30, %s1448_s14  ;;  %v686_v30 = vld [vmem:[#allocation2 + $0x260] sm:$0xff] }
 0x1d8   :  { %v910_v51 = vadd.f32 %v894_v1, %v812_v29  ;;  %v911_v56 = vadd.f32 %v895_v59, %v813_v33  ;;  %v849_v21 = vpop.permute.xlu1 %848  ;;  %v923_v52 = vpop.permute.xlu0 %922  ;;  %v1187_v29 = vld [vmem:[%s2342_s6] sm:$0xff] }
 0x1d9   :  { %v855_v20 = vsel %vm852_vm6, %v841_v55, %v849_v21  ;;  %v867_v61 = vsel %vm852_vm6, %v849_v21, %v825_v28  ;;  %v978_v28 = vld [vmem:[#allocation2 + $0x3d0] sm:$0xff] }
 0x1da   :  { %v896_v42 = vmul.f32 %v880_v48, %v855_v20  ;;  %v897_v35 = vmul.f32 %v881_v17, %v867_v61  ;;  %1032 = vrot.lane.b32.xlu1 %v1546_v27, %s1448_s14  ;;  %1040 = vrot.lane.b32.xlu0 %v1558_v32, %s1448_s14  ;;  %v637_v32 = vld [vmem:[#allocation2 + $0x1e0] sm:$0xff] }
 0x1dc   :  { %v912_v18 = vadd.f32 %v896_v42, %v814_v16  ;;  %v913_v34 = vadd.f32 %v897_v35, %v815_v58  ;;  %v931_v60 = vpop.permute.xlu1 %930  ;;  %v939_v0 = vpop.permute.xlu0 %938 }
 0x1dd   :  { %v961_v33 = vsel %vm950_vm7, %v923_v52, %v931_v60  ;;  %v957_v40 = vsel %vm950_vm7, %v931_v60, %v939_v0 }
 0x1de   :  { %v992_v50 = vmul.f32 %v976_v53, %v961_v33  ;;  %v993_v54 = vmul.f32 %v977_v22, %v957_v40  ;;  %1120 = vperm.xlu1 %1387, %v1114_v41   ;;  %1190 = vperm.xlu0 %1386, %v1187_v29   ;;  %v360_v41 = vld [vmem:[#allocation2 + $0x68] sm:$0xff] }
 0x1df   :  { %v442_v33 = vld [vmem:[#allocation2 + $0xe8] sm:$0xff] }
 0x1e0   :  { %v2019_v46 = vadd.f32 %v992_v50, %v910_v51  ;;  %v2021_v45 = vadd.f32 %v993_v54, %v911_v56  ;;  %v947_v47 = vpop.permute.xlu1 %946  ;;  %v303_v6 = vpop.permute.xlu0 %302  ;;  %v443_v50 = vld [vmem:[#allocation2 + $0xf0] sm:$0xff] }
 0x1e1   :  { %v953_v37 = vsel %vm950_vm7, %v939_v0, %v947_v47  ;;  %v965_v19 = vsel %vm950_vm7, %v947_v47, %v923_v52  ;;  %v359_v0 = vld [vmem:[#allocation2 + $0x60] sm:$0xff]  ;;  %v361_v47 = vld [vmem:[#allocation2 + $0x70] sm:$0xff] }
 0x1e2   :  { %2382 = vst [vmem:[#allocation29_spill] sm:$0xff] %v2019_v46  ;;  %2383 = vst [vmem:[#allocation30_spill] sm:$0xff] %v2021_v45  ;;  %v994_v63 = vmul.f32 %v978_v28, %v953_v37  ;;  %v995_v2 = vmul.f32 %v979_v43, %v965_v19  ;;  %v539_v19 = vld [vmem:[#allocation2 + $0x160] sm:$0xff]  ;;  %v640_v45 = vld [vmem:[#allocation2 + $0x1f8] sm:$0xff] }
 0x1e4   :  { %v2027_v16 = vadd.f32 %v994_v63, %v912_v18  ;;  %v2029_v58 = vadd.f32 %v995_v2, %v913_v34  ;;  %v311_v15 = vpop.permute.xlu1 %310  ;;  %v319_v55 = vpop.permute.xlu0 %318  ;;  %v441_v34 = vld [vmem:[#allocation2 + $0xe0] sm:$0xff]  ;;  %v362_v2 = vld [vmem:[#allocation2 + $0x78] sm:$0xff] }
 0x1e5   :  { %v342_v18 = vsel %vm330_vm1, %v303_v6, %v311_v15  ;;  %v338_v37 = vsel %vm330_vm1, %v311_v15, %v319_v55 }
 0x1e6   :  { %2384 = vst [vmem:[#allocation31_spill] sm:$0xff] %v2027_v16  ;;  %2385 = vst [vmem:[#allocation32_spill] sm:$0xff] %v2029_v58  ;;  %v376_v43 = vmul.f32 %v360_v41, %v342_v18  ;;  %v540_v41 = vld [vmem:[#allocation2 + $0x168] sm:$0xff]  ;;  %v541_v58 = vld [vmem:[#allocation2 + $0x170] sm:$0xff] }
 0x1e7   :  { %v639_v16 = vld [vmem:[#allocation2 + $0x1f0] sm:$0xff] }
 0x1e8   :  { %v327_v57 = vpop.permute.xlu1 %326  ;;  %v386_v36 = vpop.permute.xlu0 %385 }
 0x1e9   :  { %v346_v29 = vsel %vm330_vm1, %v327_v57, %v303_v6 }
 0x1ea   :  { %v375_v15 = vmul.f32 %v359_v0, %v346_v29  ;;  %v377_v0 = vmul.f32 %v361_v47, %v338_v37 }
 0x1ec   :  { %v394_v1 = vpop.permute.xlu1 %393  ;;  %v402_v59 = vpop.permute.xlu0 %401 }
 0x1ed   :  { %v423_v40 = vsel %vm411_vm2, %v386_v36, %v394_v1  ;;  %v419_v54 = vsel %vm411_vm2, %v394_v1, %v402_v59 }
 0x1ee   :  { %v458_v25 = vmul.f32 %v442_v33, %v423_v40  ;;  %v459_v24 = vmul.f32 %v443_v50, %v419_v54 }
 0x1f0   :  { %v410_v48 = vpop.permute.xlu1 %409  ;;  %v484_v17 = vpop.permute.xlu0 %483  ;;  %v475_v47 = vadd.f32 %v459_v24, %v377_v0  ;;  %v883_v0 = vld [vmem:[#allocation2 + $0x368] sm:$0xff] }
 0x1f1   :  { %v427_v60 = vsel %vm411_vm2, %v410_v48, %v386_v36  ;;  %v334_v36 = vsel %vm330_vm1, %v319_v55, %v327_v57  ;;  %v415_v1 = vsel %vm411_vm2, %v402_v59, %v410_v48  ;;  %v542_v57 = vld [vmem:[#allocation2 + $0x178] sm:$0xff] }
 0x1f2   :  { %v457_v4 = vmul.f32 %v441_v34, %v427_v60  ;;  %v638_v34 = vld [vmem:[#allocation2 + $0x1e8] sm:$0xff]  ;;  %v378_v29 = vmul.f32 %v362_v2, %v334_v36  ;;  %v460_v33 = vmul.f32 %v444_v49, %v415_v1 }
 0x1f4   :  { %v492_v51 = vpop.permute.xlu1 %491  ;;  %v500_v56 = vpop.permute.xlu0 %499  ;;  %v473_v54 = vadd.f32 %v457_v4, %v375_v15  ;;  %v476_v2 = vadd.f32 %v460_v33, %v378_v29 }
 0x1f5   :  { %v521_v18 = vsel %vm509_vm3, %v484_v17, %v492_v51  ;;  %v517_v55 = vsel %vm509_vm3, %v492_v51, %v500_v56 }
 0x1f6   :  { %v556_v40 = vmul.f32 %v540_v41, %v521_v18  ;;  %v687_v41 = vld [vmem:[#allocation2 + $0x268] sm:$0xff]  ;;  %v688_v18 = vld [vmem:[#allocation2 + $0x270] sm:$0xff] }
 0x1f8   :  { %v508_v21 = vpop.permute.xlu1 %507  ;;  %v582_v20 = vpop.permute.xlu0 %581 }
 0x1f9   :  { %v525_v63 = vsel %vm509_vm3, %v508_v21, %v484_v17  ;;  %v513_v59 = vsel %vm509_vm3, %v500_v56, %v508_v21 }
 0x1fa   :  { %v555_v48 = vmul.f32 %v539_v19, %v525_v63  ;;  %v474_v19 = vadd.f32 %v458_v25, %v376_v43  ;;  %v557_v63 = vmul.f32 %v541_v58, %v517_v55  ;;  %v558_v46 = vmul.f32 %v542_v57, %v513_v59  ;;  %v784_v58 = vld [vmem:[#allocation2 + $0x2e0] sm:$0xff]  ;;  %v786_v57 = vld [vmem:[#allocation2 + $0x2f0] sm:$0xff] }
 0x1fb   :  { %v704_v43 = vmul.f32 %v688_v18, %v1762_v38  ;;  %v787_v38 = vld [vmem:[#allocation2 + $0x2f8] sm:$0xff] }
 0x1fc   :  { %v590_v61 = vpop.permute.xlu1 %589  ;;  %v598_v52 = vpop.permute.xlu0 %597  ;;  %v571_v37 = vadd.f32 %v555_v48, %v473_v54  ;;  %v572_v36 = vadd.f32 %v556_v40, %v474_v19  ;;  %v980_v40 = vld [vmem:[#allocation2 + $0x3e0] sm:$0xff]  ;;  %v981_v19 = vld [vmem:[#allocation2 + $0x3e8] sm:$0xff] }
 0x1fd   :  { %v619_v17 = vsel %vm607_vm4, %v582_v20, %v590_v61  ;;  %v615_v51 = vsel %vm607_vm4, %v590_v61, %v598_v52  ;;  %v689_v61 = vld [vmem:[#allocation2 + $0x278] sm:$0xff] }
 0x1fe   :  { %v655_v4 = vmul.f32 %v639_v16, %v615_v51  ;;  %v785_v16 = vld [vmem:[#allocation2 + $0x2e8] sm:$0xff] }
 0x200   :  { %v606_v42 = vpop.permute.xlu1 %605  ;;  %v2031_v35 = vpop.permute.xlu0 %728 }
 0x201   :  { %v623_v27 = vsel %vm607_vm4, %v606_v42, %v582_v20  ;;  %v611_v56 = vsel %vm607_vm4, %v598_v52, %v606_v42  ;;  %v654_v20 = vmul.f32 %v638_v34, %v619_v17  ;;  %v702_v52 = vmul.f32 %v686_v30, %v1751_v31 }
 0x202   :  { %v653_v21 = vmul.f32 %v637_v32, %v623_v27  ;;  %v656_v1 = vmul.f32 %v640_v45, %v611_v56  ;;  %v573_v27 = vadd.f32 %v557_v63, %v475_v47  ;;  %v574_v32 = vadd.f32 %v558_v46, %v476_v2  ;;  %v884_v56 = vld [vmem:[#allocation2 + $0x370] sm:$0xff]  ;;  %v885_v47 = vld [vmem:[#allocation2 + $0x378] sm:$0xff] }
 0x203   :  { %v670_v25 = vadd.f32 %v654_v20, %v572_v36  ;;  %v703_v42 = vmul.f32 %v687_v41, %v1764_v39  ;;  %v705_v30 = vmul.f32 %v689_v61, %v1774_v44  ;;  %v882_v39 = vld [vmem:[#allocation2 + $0x360] sm:$0xff]  ;;  %v982_v41 = vld [vmem:[#allocation2 + $0x3f0] sm:$0xff] }
 0x204   :  { %v2033_v53 = vpop.permute.xlu1 %736  ;;  %v2035_v22 = vpop.permute.xlu0 %744  ;;  %v669_v7 = vadd.f32 %v653_v21, %v571_v37  ;;  %v671_v46 = vadd.f32 %v655_v4, %v573_v27  ;;  %v672_v55 = vadd.f32 %v656_v1, %v574_v32  ;;  %v983_v27 = vld [vmem:[#allocation2 + $0x3f8] sm:$0xff] }
 0x205   :  { %v766_v24 = vsel %vm754_vm5, %v2031_v35, %v2033_v53  ;;  %v762_v45 = vsel %vm754_vm5, %v2033_v53, %v2035_v22  ;;  %v719_v33 = vadd.f32 %v703_v42, %v670_v25  ;;  %v1078_v25 = vld [vmem:[#allocation2 + $0x460] sm:$0xff] }
 0x206   :  { %v718_v53 = vadd.f32 %v702_v52, %v669_v7  ;;  %v800_v17 = vmul.f32 %v784_v58, %v766_v24  ;;  %v721_v4 = vadd.f32 %v705_v30, %v672_v55 }
 0x208   :  { %v2047_v28 = vpop.permute.xlu1 %752  ;;  %v2053_v6 = vpop.permute.xlu0 %826  ;;  %v816_v36 = vadd.f32 %v800_v17, %v718_v53  ;;  %v1081_v53 = vld [vmem:[#allocation2 + $0x478] sm:$0xff] }
 0x209   :  { %v758_v59 = vsel %vm754_vm5, %v2035_v22, %v2047_v28  ;;  %v770_v44 = vsel %vm754_vm5, %v2047_v28, %v2031_v35  ;;  %v801_v22 = vmul.f32 %v785_v16, %v762_v45 }
 0x20a   :  { %v802_v7 = vmul.f32 %v786_v57, %v758_v59  ;;  %v803_v63 = vmul.f32 %v787_v38, %v770_v44 }
 0x20b   :  { %v817_v18 = vadd.f32 %v801_v22, %v719_v33 }
 0x20c   :  { %v835_v60 = vpop.permute.xlu1 %834  ;;  %v843_v50 = vpop.permute.xlu0 %842  ;;  %v819_v16 = vadd.f32 %v803_v63, %v721_v4 }
 0x20d   :  { %v864_v48 = vsel %vm852_vm6, %v2053_v6, %v835_v60  ;;  %v860_v29 = vsel %vm852_vm6, %v835_v60, %v843_v50  ;;  %v720_v60 = vadd.f32 %v704_v43, %v671_v46 }
 0x20e   :  { %v898_v51 = vmul.f32 %v882_v39, %v864_v48  ;;  %v899_v20 = vmul.f32 %v883_v0, %v860_v29 }
 0x20f   :  { %v818_v58 = vadd.f32 %v802_v7, %v720_v60 }
 0x210   :  { %v851_v49 = vpop.permute.xlu1 %850  ;;  %v925_v15 = vpop.permute.xlu0 %924  ;;  %v914_v24 = vadd.f32 %v898_v51, %v816_v36  ;;  %v915_v45 = vadd.f32 %v899_v20, %v817_v18 }
 0x211   :  { %v856_v21 = vsel %vm852_vm6, %v843_v50, %v851_v49  ;;  %v868_v37 = vsel %vm852_vm6, %v851_v49, %v2053_v6  ;;  %v1079_v49 = vld [vmem:[#allocation2 + $0x468] sm:$0xff] }
 0x212   :  { %v900_v61 = vmul.f32 %v884_v56, %v856_v21  ;;  %v901_v42 = vmul.f32 %v885_v47, %v868_v37 }
 0x214   :  { %v933_v31 = vpop.permute.xlu1 %932  ;;  %v941_v34 = vpop.permute.xlu0 %940  ;;  %v917_v17 = vadd.f32 %v901_v42, %v819_v16  ;;  %v343_v42 = vsel %vm330_vm1, %v1708_v10, %v1686_v5  ;;  %v429_v16 = vld [vmem:[#allocation2 + $0x80] sm:$0xff] }
 0x215   :  { %v962_v54 = vsel %vm950_vm7, %v925_v15, %v933_v31  ;;  %v958_v35 = vsel %vm950_vm7, %v933_v31, %v941_v34 }
 0x216   :  { %v996_v1 = vmul.f32 %v980_v40, %v962_v54  ;;  %v997_v52 = vmul.f32 %v981_v19, %v958_v35 }
 0x218   :  { %v949_v28 = vpop.permute.xlu1 %948  ;;  %v1023_v2 = vpop.permute.xlu0 %1022  ;;  %v1012_v46 = vadd.f32 %v996_v1, %v914_v24  ;;  %v1013_v39 = vadd.f32 %v997_v52, %v915_v45  ;;  %v347_v24 = vld [vmem:[#allocation2] sm:$0xff]  ;;  %v424_v45 = vsel %vm411_vm2, %v1724_v14, %v1702_v9 }
 0x219   :  { %v954_v50 = vsel %vm950_vm7, %v941_v34, %v949_v28  ;;  %v966_v32 = vsel %vm950_vm7, %v949_v28, %v925_v15  ;;  %v916_v15 = vadd.f32 %v900_v61, %v818_v58  ;;  %v1080_v34 = vld [vmem:[#allocation2 + $0x470] sm:$0xff]  ;;  %v675_v58 = vld [vmem:[#allocation2 + $0x208] sm:$0xff] }
 0x21a   :  { %v998_v43 = vmul.f32 %v982_v41, %v954_v50  ;;  %v999_v55 = vmul.f32 %v983_v27, %v966_v32  ;;  %v674_v32 = vld [vmem:[#allocation2 + $0x200] sm:$0xff] }
 0x21c   :  { %v1031_v6 = vpop.permute.xlu1 %1030  ;;  %v1039_v31 = vpop.permute.xlu0 %1038  ;;  %v1014_v0 = vadd.f32 %v998_v43, %v916_v15  ;;  %v1015_v54 = vadd.f32 %v999_v55, %v917_v17  ;;  %v431_v43 = vld [vmem:[#allocation2 + $0x90] sm:$0xff]  ;;  %v2387_v15 = vld [vmem:[#allocation9_spill] sm:$0xff] }
 0x21d   :  { %v1060_v30 = vsel %vm1048_vm8, %v1023_v2, %v1031_v6  ;;  %v1056_v59 = vsel %vm1048_vm8, %v1031_v6, %v1039_v31  ;;  %v430_v6 = vld [vmem:[#allocation2 + $0x88] sm:$0xff] }
 0x21e   :  { %v1094_v57 = vmul.f32 %v1078_v25, %v1060_v30  ;;  %v1095_v48 = vmul.f32 %v1079_v49, %v1056_v59  ;;  %v348_v25 = vld [vmem:[#allocation2 + $0x8] sm:$0xff]  ;;  %v420_v49 = vsel %vm411_vm2, %v1702_v9, %v1716_v12  ;;  %v416_v30 = vsel %vm411_vm2, %v1716_v12, %v1710_v11 }
 0x21f   :  { %v446_v17 = vmul.f32 %v430_v6, %v420_v49 }
 0x220   :  { %v1110_v38 = vadd.f32 %v1094_v57, %v1012_v46  ;;  %v1047_v44 = vpop.permute.xlu1 %1046  ;;  %v1111_v29 = vadd.f32 %v1095_v48, %v1013_v39  ;;  %v2120_v40 = vpop.permute.xlu0 %844  ;;  %v2159_v46 = vmul.f32 %v674_v32, %v1540_v23  ;;  %v2386_v57 = vld [vmem:[#allocation13_spill] sm:$0xff]  ;;  %v2170_v39 = vmul.f32 %v675_v58, %v2387_v15 }
 0x221   :  { %v1052_v33 = vsel %vm1048_vm8, %v1039_v31, %v1047_v44  ;;  %v1064_v22 = vsel %vm1048_vm8, %v1047_v44, %v1023_v2  ;;  %v527_v31 = vld [vmem:[#allocation2 + $0x100] sm:$0xff]  ;;  %v335_v9 = vsel %vm330_vm1, %v1700_v8, %v2386_v57  ;;  %v331_v12 = vsel %vm330_vm1, %v2386_v57, %v1708_v10  ;;  %v627_v57 = vld [vmem:[#allocation2 + $0x190] sm:$0xff] }
 0x222   :  { %v1150_v7 = vadd.f32 %v1678_v3, %v1110_v38  ;;  %v1096_v51 = vmul.f32 %v1080_v34, %v1052_v33  ;;  %v1097_v56 = vmul.f32 %v1081_v53, %v1064_v22  ;;  %v1151_v21 = vadd.f32 %v1678_v3, %v1111_v29  ;;  %v349_v34 = vld [vmem:[#allocation2 + $0x10] sm:$0xff]  ;;  %v350_v53 = vld [vmem:[#allocation2 + $0x18] sm:$0xff]  ;;  %v528_v29 = vld [vmem:[#allocation2 + $0x108] sm:$0xff] }
 0x223   :  { %v363_v23 = vmul.f32 %v347_v24, %v343_v42  ;;  %v432_v38 = vld [vmem:[#allocation2 + $0x98] sm:$0xff]  ;;  %v445_v44 = vmul.f32 %v429_v16, %v424_v45 }
 0x224   :  { %v1166_v19 = vmax.f32 %v1150_v7, 0.0  ;;  %v1112_v35 = vadd.f32 %v1096_v51, %v1014_v0  ;;  %v1113_v28 = vadd.f32 %v1097_v56, %v1015_v54  ;;  %v2124_v60 = vpop.permute.xlu1 %920  ;;  %v2126_v63 = vpop.permute.xlu0 %928  ;;  %v1167_v20 = vmax.f32 %v1151_v21, 0.0  ;;  %v2388_v33 = vld [vmem:[#allocation15_spill] sm:$0xff]  ;;  %v625_v54 = vld [vmem:[#allocation2 + $0x180] sm:$0xff] }
 0x225   :  { %v447_v0 = vmul.f32 %v431_v43, %v416_v30  ;;  %v518_v10 = vsel %vm509_vm3, %v1718_v13, %v2388_v33  ;;  %v2389_v7 = vld [vmem:[#allocation16_spill] sm:$0xff] }
 0x226   :  { %v1152_v47 = vadd.f32 %v1678_v3, %v1112_v35  ;;  %v1182_v37 = vmin.f32 %v1166_v19, 6.0  ;;  %v1183_v2 = vmin.f32 %v1167_v20, 6.0  ;;  %v1153_v36 = vadd.f32 %v1678_v3, %v1113_v28  ;;  %v2390_v51 = vld [vmem:[#allocation20_spill] sm:$0xff]  ;;  %v1076_v35 = vld [vmem:[#allocation2 + $0x450] sm:$0xff]  ;;  %v1077_v28 = vld [vmem:[#allocation2 + $0x458] sm:$0xff] }
 0x227   :  { %v339_v3 = vsel %vm330_vm1, %v1686_v5, %v1700_v8  ;;  %v522_v5 = vsel %vm509_vm3, %v1743_v26, %v1718_v13  ;;  %v412_v8 = vsel %vm411_vm2, %v1710_v11, %v1724_v14  ;;  %v620_v56 = vsel %vm607_vm4, %v2390_v51, %v2389_v7  ;;  %v1074_v21 = vld [vmem:[#allocation2 + $0x440] sm:$0xff]  ;;  %v1075_v11 = vld [vmem:[#allocation2 + $0x448] sm:$0xff] }
 0x228   :  { %v1168_v4 = vmax.f32 %v1152_v47, 0.0  ;;  %v2130_v1 = vpop.permute.xlu1 %936  ;;  %1221 = vmatprep.subr.mxu0 %v1183_v2  ;;  %v2132_v41 = vpop.permute.xlu0 %944  ;;  %v1169_v50 = vmax.f32 %v1153_v36, 0.0  ;;  %v364_v59 = vmul.f32 %v348_v25, %v339_v3  ;;  %v543_v22 = vmul.f32 %v527_v31, %v522_v5  ;;  %v626_v36 = vld [vmem:[#allocation2 + $0x188] sm:$0xff]  ;;  %v530_v5 = vld [vmem:[#allocation2 + $0x118] sm:$0xff] }
 0x229   :  { %1222 = vmatpush1.msra.mxu0 %v1182_v37  ;;  %v365_v47 = vmul.f32 %v349_v34, %v335_v9  ;;  %v366_v37 = vmul.f32 %v350_v53, %v331_v12  ;;  %v448_v2 = vmul.f32 %v432_v38, %v412_v8  ;;  %v544_v25 = vmul.f32 %v528_v29, %v518_v10  ;;  %v2393_v9 = vld [vmem:[#allocation17_spill] sm:$0xff]  ;;  %v2394_v34 = vld [vmem:[#allocation22_spill] sm:$0xff]  ;;  %v2395_v53 = vld [vmem:[#allocation19_spill] sm:$0xff] }
 0x22a   :  { %v1184_v18 = vmin.f32 %v1168_v4, 6.0  ;;  %v1185_v61 = vmin.f32 %v1169_v50, 6.0  ;;  %v2391_v4 = vld [vmem:[#allocation18_spill] sm:$0xff]  ;;  %v641_v3 = vmul.f32 %v625_v54, %v620_v56  ;;  %v462_v49 = vadd.f32 %v446_v17, %v364_v59  ;;  %v628_v17 = vld [vmem:[#allocation2 + $0x198] sm:$0xff]  ;;  %v2396_v38 = vld [vmem:[#allocation29_spill] sm:$0xff] }
 0x22b   :  { %v616_v50 = vsel %vm607_vm4, %v2389_v7, %v2391_v4  ;;  %v463_v16 = vadd.f32 %v447_v0, %v365_v47  ;;  %v464_v30 = vadd.f32 %v448_v2, %v366_v37  ;;  %v612_v12 = vsel %vm607_vm4, %v2391_v4, %v2393_v9  ;;  %v2398_v29 = vld [vmem:[#allocation31_spill] sm:$0xff]  ;;  %v2399_v10 = vld [vmem:[#allocation32_spill] sm:$0xff] }
 0x22c   :  { %v1021_v52 = vpop.permute.xlu1 %1020  ;;  %1292 = vmatprep.subr.mxu1 %v1185_v61  ;;  %v1029_v27 = vpop.permute.xlu0 %1028  ;;  %v529_v61 = vld [vmem:[#allocation2 + $0x110] sm:$0xff]  ;;  %v642_v43 = vmul.f32 %v626_v36, %v616_v50  ;;  %v560_v15 = vadd.f32 %v544_v25, %v462_v49  ;;  %v608_v59 = vsel %vm607_vm4, %v2393_v9, %v2390_v51  ;;  %v643_v7 = vmul.f32 %v627_v57, %v612_v12  ;;  %v2400_v51 = vld [vmem:[#allocation21_spill] sm:$0xff]  ;;  %v677_v57 = vld [vmem:[#allocation2 + $0x218] sm:$0xff] }
 0x22d   :  { %1293 = vmatpush1.msra.mxu1 %v1184_v18  ;;  %v1059_v19 = vsel %vm1048_vm8, %v1021_v52, %v1029_v27  ;;  %v461_v18 = vadd.f32 %v445_v44, %v363_v23  ;;  %v763_v23 = vsel %vm754_vm5, %v2395_v53, %v2394_v34  ;;  %v2397_v44 = vld [vmem:[#allocation30_spill] sm:$0xff]  ;;  %v644_v2 = vmul.f32 %v628_v17, %v608_v59 }
 0x22e   :  { %v658_v56 = vadd.f32 %v642_v43, %v560_v15  ;;  %v871_v43 = vld [vmem:[#allocation2 + $0x308] sm:$0xff]  ;;  %v956_v17 = vsel %vm950_vm7, %v2126_v63, %v2130_v1 }
 0x22f   :  { %v559_v45 = vadd.f32 %v543_v22, %v461_v18 }
 0x230   :  { %v1045_v55 = vpop.permute.xlu0 %1044  ;;  %v1037_v48 = vpop.permute.xlu1 %1036 }
 0x231   :  { %v1055_v14 = vsel %vm1048_vm8, %v1029_v27, %v1037_v48  ;;  %v1051_v13 = vsel %vm1048_vm8, %v1037_v48, %v1045_v55  ;;  %v1063_v20 = vsel %vm1048_vm8, %v1045_v55, %v1021_v52  ;;  %v2392_v27 = vld [vmem:[#allocation14_spill] sm:$0xff]  ;;  %v1090_v52 = vmul.f32 %v1074_v21, %v1059_v19 }
 0x232   :  { %v514_v32 = vsel %vm509_vm3, %v2388_v33, %v2392_v27  ;;  %v1091_v24 = vmul.f32 %v1075_v11, %v1055_v14  ;;  %v1092_v42 = vmul.f32 %v1076_v35, %v1051_v13  ;;  %v1093_v6 = vmul.f32 %v1077_v28, %v1063_v20  ;;  %v773_v14 = vld [vmem:[#allocation2 + $0x288] sm:$0xff]  ;;  %v676_v35 = vld [vmem:[#allocation2 + $0x210] sm:$0xff] }
 0x233   :  { %v545_v31 = vmul.f32 %v529_v61, %v514_v32  ;;  %v510_v55 = vsel %vm509_vm3, %v2392_v27, %v1743_v26  ;;  %v657_v48 = vadd.f32 %v641_v3, %v559_v45  ;;  %v772_v26 = vld [vmem:[#allocation2 + $0x280] sm:$0xff]  ;;  %v1106_v8 = vadd.f32 %v1090_v52, %v2396_v38  ;;  %v974_v38 = vld [vmem:[#allocation2 + $0x3b0] sm:$0xff] }
 0x234   :  { %v2200_v58 = vpop.permute.xlu0 %918  ;;  %v1107_v0 = vadd.f32 %v1091_v24, %v2397_v44  ;;  %v1108_v33 = vadd.f32 %v1092_v42, %v2398_v29  ;;  %v1109_v22 = vadd.f32 %v1093_v6, %v2399_v10  ;;  %v546_v54 = vmul.f32 %v530_v5, %v510_v55  ;;  %v2401_v3 = vld [vmem:[#allocation8_spill] sm:$0xff]  ;;  %v2404_v55 = vld [vmem:[#allocation11_spill] sm:$0xff] }
 0x235   :  { %v759_v21 = vsel %vm754_vm5, %v2394_v34, %v2400_v51  ;;  %v561_v37 = vadd.f32 %v545_v31, %v463_v16  ;;  %v706_v36 = vadd.f32 %v2159_v46, %v657_v48  ;;  %v788_v4 = vmul.f32 %v772_v26, %v763_v23  ;;  %v870_v16 = vld [vmem:[#allocation2 + $0x300] sm:$0xff]  ;;  %v2403_v46 = vld [vmem:[#allocation23_spill] sm:$0xff]  ;;  %v973_v23 = vld [vmem:[#allocation2 + $0x3a8] sm:$0xff] }
 0x236   :  { %v562_v32 = vadd.f32 %v546_v54, %v464_v30  ;;  %v789_v25 = vmul.f32 %v773_v14, %v759_v21  ;;  %v692_v52 = vmul.f32 %v676_v35, %v2401_v3  ;;  %v707_v6 = vadd.f32 %v2170_v39, %v658_v56  ;;  %v2402_v31 = vld [vmem:[#allocation12_spill] sm:$0xff]  ;;  %v774_v54 = vld [vmem:[#allocation2 + $0x290] sm:$0xff] }
 0x237   :  { %v659_v42 = vadd.f32 %v643_v7, %v561_v37  ;;  %v857_v5 = vsel %vm852_vm6, %v2403_v46, %v2402_v31  ;;  %v861_v30 = vsel %vm852_vm6, %v2404_v55, %v2403_v46  ;;  %v804_v59 = vadd.f32 %v788_v4, %v706_v36  ;;  %v972_v48 = vld [vmem:[#allocation2 + $0x3a0] sm:$0xff]  ;;  %v775_v7 = vld [vmem:[#allocation2 + $0x298] sm:$0xff]  ;;  %v1072_v46 = vld [vmem:[#allocation2 + $0x430] sm:$0xff] }
 0x238   :  { %v2226_v19 = vpop.permute.xlu0 %934  ;;  %v660_v39 = vadd.f32 %v644_v2, %v562_v32  ;;  %v960_v34 = vsel %vm950_vm7, %v2124_v60, %v2126_v63  ;;  %v805_v26 = vadd.f32 %v789_v25, %v707_v6  ;;  %v952_v44 = vsel %vm950_vm7, %v2130_v1, %v2132_v41  ;;  %v2406_v56 = vld [vmem:[#allocation24_spill] sm:$0xff]  ;;  %v872_v6 = vld [vmem:[#allocation2 + $0x310] sm:$0xff] }
 0x239   :  { %v887_v10 = vmul.f32 %v871_v43, %v857_v5  ;;  %v755_v1 = vsel %vm754_vm5, %v2400_v51, %v2406_v56  ;;  %v989_v21 = vmul.f32 %v973_v23, %v956_v17  ;;  %v1070_v35 = vld [vmem:[#allocation2 + $0x420] sm:$0xff]  ;;  %v1073_v5 = vld [vmem:[#allocation2 + $0x438] sm:$0xff] }
 0x23a   :  { %v790_v51 = vmul.f32 %v774_v54, %v755_v1 }
 0x23c   :  { %v2241_v9 = vpop.permute.xlu0 %1018 }
 0x23d   :  { %v1131_v11 = vpop.permute.xlu1 %1130 }
 0x23e   :  { %v1146_v28 = vadd.f32 %v1131_v11, %v1106_v8  ;;  %v1148_v13 = vadd.f32 %v1131_v11, %v1108_v33  ;;  %v1147_v20 = vadd.f32 %v1131_v11, %v1107_v0  ;;  %v1149_v47 = vadd.f32 %v1131_v11, %v1109_v22  ;;  %v975_v8 = vld [vmem:[#allocation2 + $0x3b8] sm:$0xff]  ;;  %v2405_v22 = vld [vmem:[#allocation10_spill] sm:$0xff] }
 0x23f   :  { %v964_v0 = vsel %vm950_vm7, %v2132_v41, %v2124_v60  ;;  %v886_v33 = vmul.f32 %v870_v16, %v861_v30  ;;  %v693_v63 = vmul.f32 %v677_v57, %v2405_v22  ;;  %v767_v60 = vsel %vm754_vm5, %v2406_v56, %v2395_v53  ;;  %v2410_v16 = vld [vmem:[#allocation28_spill] sm:$0xff]  ;;  %v873_v30 = vld [vmem:[#allocation2 + $0x318] sm:$0xff] }
 0x240   :  { %v1162_v50 = vmax.f32 %v1146_v28, 0.0  ;;  %v1164_v18 = vmax.f32 %v1148_v13, 0.0  ;;  %v1163_v61 = vmax.f32 %v1147_v20, 0.0  ;;  %v1165_v27 = vmax.f32 %v1149_v47, 0.0  ;;  %v1071_v28 = vld [vmem:[#allocation2 + $0x428] sm:$0xff]  ;;  %v1035_v2 = vpop.permute.xlu0 %1034  ;;  %v968_v57 = vld [vmem:[#allocation2 + $0x380] sm:$0xff] }
 0x241   :  { %v2230_v24 = vpop.permute.xlu1 %926  ;;  %v988_v41 = vmul.f32 %v972_v48, %v960_v34  ;;  %v990_v11 = vmul.f32 %v974_v38, %v952_v44  ;;  %v991_v14 = vmul.f32 %v975_v8, %v964_v0  ;;  %v2268_v13 = vadd.f32 %v886_v33, %v804_v59 }
 0x242   :  { %v1178_v49 = vmin.f32 %v1162_v50, 6.0  ;;  %v1180_v45 = vmin.f32 %v1164_v18, 6.0  ;;  %v1179_v12 = vmin.f32 %v1163_v61, 6.0  ;;  %v1181_v15 = vmin.f32 %v1165_v27, 6.0  ;;  %v2407_v18 = vld [vmem:[#allocation25_spill] sm:$0xff]  ;;  %v2408_v27 = vld [vmem:[#allocation26_spill] sm:$0xff] }
 0x243   :  { %v2270_v20 = vadd.f32 %v887_v10, %v805_v26  ;;  %v708_v47 = vadd.f32 %v692_v52, %v659_v42  ;;  %v709_v37 = vadd.f32 %v693_v63, %v660_v39  ;;  %v791_v4 = vmul.f32 %v775_v7, %v767_v60  ;;  %v971_v26 = vld [vmem:[#allocation2 + $0x398] sm:$0xff]  ;;  %v1066_v7 = vld [vmem:[#allocation2 + $0x400] sm:$0xff] }
 0x244   :  { %1223 = vmatprep.subr.mxu0 %v1179_v12  ;;  %1294 = vmatprep.subr.mxu1 %v1181_v15  ;;  %v1004_v61 = vadd.f32 %v988_v41, %v2407_v18  ;;  %v1005_v32 = vadd.f32 %v989_v21, %v2408_v27  ;;  %v853_v52 = vsel %vm852_vm6, %v2402_v31, %v2120_v40  ;;  %v969_v12 = vld [vmem:[#allocation2 + $0x388] sm:$0xff] }
 0x245   :  { %v943_v29 = vpop.permute.xlu1 %942  ;;  %1224 = vmatpush1.msra.mxu0 %v1178_v49  ;;  %1295 = vmatpush1.msra.mxu1 %v1180_v45  ;;  %v865_v42 = vsel %vm852_vm6, %v2120_v40, %v2404_v55  ;;  %v2409_v49 = vld [vmem:[#allocation27_spill] sm:$0xff]  ;;  %v1007_v43 = vadd.f32 %v991_v14, %v2410_v16  ;;  %v955_v15 = vsel %vm950_vm7, %v2230_v24, %v2226_v19 }
 0x246   :  { %v1006_v45 = vadd.f32 %v990_v11, %v2409_v49  ;;  %v959_v31 = vsel %vm950_vm7, %v2200_v58, %v2230_v24  ;;  %v951_v59 = vsel %vm950_vm7, %v2226_v19, %v943_v29  ;;  %v963_v48 = vsel %vm950_vm7, %v943_v29, %v2200_v58  ;;  %v970_v24 = vld [vmem:[#allocation2 + $0x390] sm:$0xff] }
 0x247   :  { %v888_v33 = vmul.f32 %v872_v6, %v853_v52  ;;  %v889_v19 = vmul.f32 %v873_v30, %v865_v42  ;;  %v984_v10 = vmul.f32 %v968_v57, %v959_v31  ;;  %v985_v22 = vmul.f32 %v969_v12, %v955_v15 }
 0x248   :  { %v806_v1 = vadd.f32 %v790_v51, %v708_v47  ;;  %v807_v60 = vadd.f32 %v791_v4, %v709_v37  ;;  %v987_v41 = vmul.f32 %v971_v26, %v963_v48  ;;  %v1068_v51 = vld [vmem:[#allocation2 + $0x410] sm:$0xff]  ;;  %v1069_v4 = vld [vmem:[#allocation2 + $0x418] sm:$0xff]  ;;  %v1186_v26 = vld [vmem:[%s2341_s5] sm:$0xff]  ;;  %s1449_s5 = smov [#allocation5]  }
 0x249   :  { %v1027_v36 = vpop.permute.xlu1 %1026  ;;  %v1001_v27 = vadd.f32 %v985_v22, %v2270_v20  ;;  %s1353_s25 = sshll.u32 %s1449_s5, 4  ;;  %s1354_s25 = int_to_ptr.vmem [resolvable:$true] %s1353_s25 }
 0x24a   :  { %v1054_v50 = vsel %vm1048_vm8, %v1027_v36, %v1035_v2  ;;  %v1058_v53 = vsel %vm1048_vm8, %v2241_v9, %v1027_v36  ;;  %v905_v36 = vadd.f32 %v889_v19, %v807_v60  ;;  %v1391_v60 = vld [vmem:[%s2336_s0 + $0x18] sm:$0xff]  ;;  %s1412_s8 = scalar_lea.vmem %s1354_s25, 512  ;;  %p1417_p6 = scmp.lt.s32.totalorder %s1354_s25, %s1354_s25 }
 0x24b   :  { %v1086_v25 = vmul.f32 %v1070_v35, %v1058_v53  ;;  %v1087_v3 = vmul.f32 %v1071_v28, %v1054_v50  ;;  %v1067_v53 = vld [vmem:[#allocation2 + $0x408] sm:$0xff]  ;;  %p1413_p5 = scmp.ne.s32.totalorder %s1354_s25, %s1412_s8  ;;  %p1418_p7 = scmp.lt.s32.totalorder %s1412_s8, %s1412_s8 }
 0x24d   :  { %v1102_v40 = vadd.f32 %v1086_v25, %v1004_v61  ;;  %v1103_v55 = vadd.f32 %v1087_v3, %v1005_v32  ;;  %v1043_v39 = vpop.permute.xlu1 %1042  ;;  %v1126_v17 = vpop.permute.xlu0 %1125  ;;  %v1000_v61 = vadd.f32 %v984_v10, %v2268_v13  ;;  %v1003_v25 = vadd.f32 %v987_v41, %v905_v36  ;;  %v1388_v10 = vld [vmem:[%s2336_s0] sm:$0xff]  ;;  %p1419_p8 = por %p1418_p7, %p1417_p6 }
 0x24e   :  { %v1050_v34 = vsel %vm1048_vm8, %v1035_v2, %v1043_v39  ;;  %v1062_v23 = vsel %vm1048_vm8, %v1043_v39, %v2241_v9  ;;  %v986_v9 = vmul.f32 %v970_v24, %v951_v59  ;;  %v904_v2 = vadd.f32 %v888_v33, %v806_v1 }
 0x24f   :  { %v1088_v38 = vmul.f32 %v1072_v46, %v1050_v34  ;;  %v1089_v8 = vmul.f32 %v1073_v5, %v1062_v23  ;;  %v1142_v44 = vadd.f32 %v1126_v17, %v1102_v40  ;;  %v1143_v0 = vadd.f32 %v1126_v17, %v1103_v55  ;;  %p1420_p9 = pnand %p1419_p8, %p1413_p5 }
 0x250   :  { %v1002_v32 = vadd.f32 %v986_v9, %v904_v2 }
 0x251   :  { %v1104_v63 = vadd.f32 %v1088_v38, %v1006_v45  ;;  %v1105_v58 = vadd.f32 %v1089_v8, %v1007_v43  ;;  %v1158_v29 = vmax.f32 %v1142_v44, 0.0  ;;  %v1017_v54 = vpop.permute.xlu1 %1016  ;;  %v1159_v56 = vmax.f32 %v1143_v0, 0.0  ;;  %v1025_v21 = vpop.permute.xlu0 %1024 }
 0x252   :  { %v1057_v35 = vsel %vm1048_vm8, %v1017_v54, %v1025_v21 }
 0x253   :  { %v1144_v11 = vadd.f32 %v1126_v17, %v1104_v63  ;;  %v1174_v14 = vmin.f32 %v1158_v29, 6.0  ;;  %v1175_v28 = vmin.f32 %v1159_v56, 6.0  ;;  %v1082_v50 = vmul.f32 %v1066_v7, %v1057_v35  ;;  %v1389_v29 = vld [vmem:[%s2336_s0 + $0x10] sm:$0xff]  ;;  %v1390_v56 = vld [vmem:[%s2336_s0 + $0x8] sm:$0xff] }
 0x254   :  { %v1145_v18 = vadd.f32 %v1126_v17, %v1105_v58 }
 0x255   :  { %v1160_v47 = vmax.f32 %v1144_v11, 0.0  ;;  %v1033_v37 = vpop.permute.xlu1 %1032  ;;  %1225 = vmatprep.subr.mxu0 %v1175_v28  ;;  %v1041_v6 = vpop.permute.xlu0 %1040  ;;  %v1098_v45 = vadd.f32 %v1082_v50, %v1000_v61 }
 0x256   :  { %v1053_v3 = vsel %vm1048_vm8, %v1025_v21, %v1033_v37  ;;  %1226 = vmatpush1.msra.mxu0 %v1174_v14  ;;  %v1161_v52 = vmax.f32 %v1145_v18, 0.0  ;;  %v1049_v13 = vsel %vm1048_vm8, %v1033_v37, %v1041_v6  ;;  %v1061_v20 = vsel %vm1048_vm8, %v1041_v6, %v1017_v54 }
 0x257   :  { %v1176_v42 = vmin.f32 %v1160_v47, 6.0  ;;  %v1083_v49 = vmul.f32 %v1067_v53, %v1053_v3  ;;  %v1084_v16 = vmul.f32 %v1068_v51, %v1049_v13  ;;  %v1085_v43 = vmul.f32 %v1069_v4, %v1061_v20 }
 0x258   :  { %v1177_v46 = vmin.f32 %v1161_v52, 6.0 }
 0x259   :  { %v1099_v5 = vadd.f32 %v1083_v49, %v1001_v27  ;;  %v1121_v30 = vpop.permute.xlu1 %1120  ;;  %v1100_v57 = vadd.f32 %v1084_v16, %v1002_v32  ;;  %v1101_v12 = vadd.f32 %v1085_v43, %v1003_v25  ;;  %v1191_v38 = vpop.permute.xlu0 %1190 }
 0x25a   :  { %v1138_v15 = vadd.f32 %v1121_v30, %v1098_v45  ;;  %1296 = vmatprep.subr.mxu1 %v1177_v46 }
 0x25b   :  { %v1139_v31 = vadd.f32 %v1121_v30, %v1099_v5  ;;  %1297 = vmatpush1.msra.mxu1 %v1176_v42  ;;  %v1140_v40 = vadd.f32 %v1121_v30, %v1100_v57  ;;  %v1141_v55 = vadd.f32 %v1121_v30, %v1101_v12 }
 0x25c   :  { %v1154_v39 = vmax.f32 %v1138_v15, 0.0 }
 0x25d   :  { %v1155_v59 = vmax.f32 %v1139_v31, 0.0  ;;  %v1156_v48 = vmax.f32 %v1140_v40, 0.0  ;;  %v1157_v34 = vmax.f32 %v1141_v55, 0.0 }
 0x25e   :  { %v1170_v23 = vmin.f32 %v1154_v39, 6.0 }
 0x25f   :  { %v1171_v62 = vmin.f32 %v1155_v59, 6.0  ;;  %v1172_v17 = vmin.f32 %v1156_v48, 6.0  ;;  %v1173_v24 = vmin.f32 %v1157_v34, 6.0 }
 0x261   :  { %1227 = vmatprep.subr.mxu0 %v1171_v62  ;;  %1298 = vmatprep.subr.mxu1 %v1173_v24 }
 0x262   :  { %1228 = vmatpush1.msra.mxu0 %v1170_v23  ;;  %1299 = vmatpush1.msra.mxu1 %v1172_v17 }
 0x263   :  { %1370 = vmatmul.mubr.msk.f32.vlgmr.msra.gmra.mxu0 %vm1193_vm9, %v1186_v26  ;;  %1371 = vmatmul.mubr.msk.f32.vlgmr.msra.gmra.mxu1 %vm1193_vm9, %v1186_v26 }
 0x323   :  { %v1263_v8 = vpop.f32.mrf.mxu0  ;;  %v1334_v0 = vpop.f32.mrf.mxu1 }
 0x324   :  { %v1264_v44 = vadd.f32 %v1263_v8, %v1191_v38  ;;  %v1335_v33 = vadd.f32 %v1334_v0, %v1191_v38 }
 0x325   :  { %v1265_v19 = vpop.f32.mrf.mxu0  ;;  %v1336_v58 = vpop.f32.mrf.mxu1 }
 0x326   :  { %v1339_v22 = vadd.f32 %v1388_v10, %v1264_v44  ;;  %v1266_v63 = vadd.f32 %v1265_v19, %v1191_v38  ;;  %v1341_v54 = vadd.f32 %v1389_v29, %v1335_v33  ;;  %v1337_v7 = vadd.f32 %v1336_v58, %v1191_v38 }
 0x328   :  { %1343 = vst [vmem:[#allocation5] sm:$0xff] %v1339_v22  ;;  %v1340_v1 = vadd.f32 %v1390_v56, %v1266_v63  ;;  %1345 = vst [vmem:[#allocation5 + $0x10] sm:$0xff] %v1341_v54  ;;  %v1342_v9 = vadd.f32 %v1391_v60, %v1337_v7 }
 0x32a   :  { %1344 = vst [vmem:[#allocation5 + $0x8] sm:$0xff] %v1340_v1  ;;  %1346 = vst [vmem:[#allocation5 + $0x18] sm:$0xff] %v1342_v9 }
 0x32b   :  { %1423 = shalt.err (!%p1420_p9)
}
 0x32c   :  { %1356 = dma.vmem_to_hbm [thread:$0]  %s1354_s25, 512, %s2343_s7, [#allocation4]  }
 0x32d   :  { %1434 = dma.done.wait [#allocation4], 512  }
 0x32e   :  { %1435 = vsyncadd [#allocation4], 4294966784 }
 0x32f   :  { %1360 = vsyncpa [#allocation3], 1 }
 0x330   :  { %1361 = vsyncpa [#allocation4], 1 }

</bundles_post_ra>
